<compile_context>
chip_gen: v7x
topology: tpu7x:2x2x1
jax: 0.10.0
libtpu: 0.0.40
codegen_flags: <defaults>
</compile_context>

<pallas_src>
import functools

import jax
import jax.numpy as jnp
from jax import lax
from jax.experimental import pallas as pl
from jax.experimental.pallas import tpu as pltpu


def _ca_kernel(steps_ref, state_ref, w1_ref, bias1_ref, w2_ref, b2_ref, out_ref,
               *, H, W, C, max_steps):
    """Full CA rollout for one sample (grid axis = batch)."""
    WC = W * C
    b = pl.program_id(0)

    # torch loop: the update at iteration i is applied iff steps_b >= max(i-1, 1),
    # so the iterations that actually change the state are exactly
    #   i = 1 .. min(max_steps - 1, steps_b + 1)      (none if steps_b < 1).
    # Running exactly that many unmasked updates reproduces the masked torch
    # loop (including its early exit) with zero wasted work and no mask math.
    steps_b = steps_ref[b]
    n_upd = jnp.minimum(steps_b + 1, max_steps - 1)
    n_upd = jnp.where(steps_b >= 1, n_upd, 0)

    # Loop-invariant zero-padding masks for the 3x3 stencil (hoisted).
    row = lax.broadcasted_iota(jnp.int32, (H, WC), 0)
    col = lax.broadcasted_iota(jnp.int32, (H, WC), 1)
    not_top = row >= 1               # y-1 exists
    not_bot = row <= H - 2           # y+1 exists
    not_left = col >= C              # x-1 exists
    not_right = col < (W - 1) * C    # x+1 exists

    bias1 = bias1_ref[0]             # (1, W*hidden): b1 + condition, pre-tiled over x
    bias2 = b2_ref[...]              # (1, W*C):      b2, pre-tiled over x

    out_ref[0] = state_ref[0]        # state carried in the lane-dense out block

    @pl.loop(0, n_upd)
    def _(_step):
        s = out_ref[0]               # (H, W*C)

        # perception = [identity, sobel_x, sobel_y] depthwise 3x3, zero padded.
        # Identity tap is `s` itself; Sobel via separability:
        #   V = s(y-1) + 2 s(y) + s(y+1),   D = s(y+1) - s(y-1)
        #   sx = V(x+1) - V(x-1),           sy = D(x-1) + 2 D(x) + D(x+1)
        # y-shifts are sublane rolls, x-shifts are lane rolls by +-C (XLU);
        # wrapped elements are zeroed with the hoisted masks.
        up = jnp.where(not_top, pltpu.roll(s, shift=1, axis=0), 0.0)         # s(y-1)
        dn = jnp.where(not_bot, pltpu.roll(s, shift=H - 1, axis=0), 0.0)     # s(y+1)
        v = up + 2.0 * s + dn
        d = dn - up
        v_r = jnp.where(not_right, pltpu.roll(v, shift=WC - C, axis=1), 0.0)  # V(x+1)
        v_l = jnp.where(not_left, pltpu.roll(v, shift=C, axis=1), 0.0)        # V(x-1)
        d_r = jnp.where(not_right, pltpu.roll(d, shift=WC - C, axis=1), 0.0)  # D(x+1)
        d_l = jnp.where(not_left, pltpu.roll(d, shift=C, axis=1), 0.0)        # D(x-1)
        sx = v_r - v_l
        sy = d_l + 2.0 * d + d_r

        # update_fn: 1x1-conv MLP evaluated directly on the lane-dense layout
        # through block-diagonal weight expansions; one fused MXU dot per layer.
        p = jnp.concatenate([s, sx, sy], axis=-1)                        # (H, 3*W*C)
        hid = jnp.dot(p, w1_ref[...], preferred_element_type=jnp.float32) + bias1
        hid = jnp.maximum(hid, 0.0)
        upd = jnp.dot(hid, w2_ref[...], preferred_element_type=jnp.float32) + bias2
        out_ref[0] = s + upd


def init_params(key, C, hidden, cond_dim):
    k1, k2, k3 = jax.random.split(key, 3)
    return dict(
        w1=jax.random.normal(k1, (3 * C, hidden), jnp.float32) * 0.1,
        b1=jnp.zeros((hidden,), jnp.float32),
        w2=jax.random.normal(k2, (hidden, C), jnp.float32) * 0.1,
        b2=jnp.zeros((C,), jnp.float32),
        wc=jax.random.normal(k3, (cond_dim, hidden), jnp.float32) * 0.1,
        bc=jnp.zeros((hidden,), jnp.float32),
    )


def cellular_automata_forward(state_nchw, n_steps, inputs, params, step_key,
                              return_trajectory=False):
    """Mirrors CellularAutomata.forward. Returns (state_nchw, trajectory)."""
    B, C, H, W = state_nchw.shape
    hidden = params["w1"].shape[1]
    WC, WH = W * C, W * hidden

    # NCHW (PyTorch) -> lane-dense (B, H, W*C): channels fastest on the lane axis.
    state = (jnp.transpose(state_nchw, (0, 2, 3, 1))
             .reshape(B, H, WC).astype(jnp.float32))

    # sample_steps (torch.randint's upper bound is exclusive, same as JAX).
    if isinstance(n_steps, tuple):
        min_steps, max_steps = n_steps
        batch_steps = jax.random.randint(step_key, (B,), min_steps, max_steps)
    else:
        max_steps = n_steps
        batch_steps = jnp.full((B,), max_steps, jnp.int32)
    batch_steps = batch_steps.astype(jnp.int32)

    # input_net (Linear), applied once outside the rollout, like the module.
    if inputs is not None:
        condition = inputs.astype(jnp.float32) @ params["wc"] + params["bc"]
    else:
        condition = jnp.zeros((B, hidden), jnp.float32)

    # Block-diagonal ("per-x") expansion of the 1x1-conv weights so the MLP
    # runs directly on the lane-dense (H, W*C)/(H, W*hidden) layouts with no
    # in-kernel relayout:  kron(I_W, w)[x*C+c, x'*hid+h] = delta(x,x') * w[c,h].
    eye_w = jnp.eye(W, dtype=jnp.float32)
    w1 = params["w1"].astype(jnp.float32)
    w1_big = jnp.concatenate(
        [jnp.kron(eye_w, w1[0:C]),            # identity taps
         jnp.kron(eye_w, w1[C:2 * C]),        # sobel_x taps
         jnp.kron(eye_w, w1[2 * C:3 * C])],   # sobel_y taps
        axis=0)                                                   # (3*W*C, W*hidden)
    w2_big = jnp.kron(eye_w, params["w2"].astype(jnp.float32))    # (W*hidden, W*C)

    # Hoisted biases: (b1 + condition) and b2 tiled over x, added once per dot.
    bias1 = jnp.tile(condition + params["b1"][None, :], (1, W)).reshape(B, 1, WH)
    bias2 = jnp.tile(params["b2"].astype(jnp.float32), W).reshape(1, WC)

    kernel = functools.partial(_ca_kernel, H=H, W=W, C=C, max_steps=int(max_steps))

    grid_spec = pltpu.PrefetchScalarGridSpec(
        num_scalar_prefetch=1,            # per-sample step counts -> SMEM scalars
        grid=(B,),
        in_specs=[
            pl.BlockSpec((1, H, WC), lambda b, steps: (b, 0, 0)),     # state
            pl.BlockSpec((3 * WC, WH), lambda b, steps: (0, 0)),      # w1_big
            pl.BlockSpec((1, 1, WH), lambda b, steps: (b, 0, 0)),     # bias1
            pl.BlockSpec((WH, WC), lambda b, steps: (0, 0)),          # w2_big
            pl.BlockSpec((1, WC), lambda b, steps: (0, 0)),           # bias2
        ],
        out_specs=pl.BlockSpec((1, H, WC), lambda b, steps: (b, 0, 0)),
    )

    out = pl.pallas_call(
        kernel,
        out_shape=jax.ShapeDtypeStruct((B, H, WC), jnp.float32),
        grid_spec=grid_spec,
        compiler_params=pltpu.CompilerParams(
            dimension_semantics=("parallel",)),   # v7x: one sample per TensorCore
    )(batch_steps, state, w1_big, bias1, w2_big, bias2)

    # TODO(synk): return_trajectory=True has a data-dependent length (torch
    # while-loop early exit) and cannot be expressed with static shapes.
    trajectory = None

    out_nchw = jnp.transpose(out.reshape(B, H, W, C), (0, 3, 1, 2))
    return out_nchw, trajectory


if __name__ == "__main__":
    key = jax.random.PRNGKey(0)
    k_state, k_inp, k_params, k_steps = jax.random.split(key, 4)

    B, C, H, W = 2, 8, 16, 16           # W * C = 128 -> exactly one lane tile
    HIDDEN, COND_DIM = 32, 4

    state = jax.random.normal(k_state, (B, C, H, W), jnp.float32)
    inputs = jax.random.normal(k_inp, (B, COND_DIM), jnp.float32)
    params = init_params(k_params, C, HIDDEN, COND_DIM)

    out, traj = cellular_automata_forward(state, (2, 8), inputs, params, k_steps)
    out = jax.block_until_ready(out)
    assert out.shape == (B, C, H, W) and out.dtype == jnp.float32
    assert bool(jnp.all(jnp.isfinite(out)))
    assert float(jnp.max(jnp.abs(out - state))) > 0.0   # updates were applied
    print("KERNEL_OK")
</pallas_src>

<mosaic_0001>
module attributes {stable_mosaic.version = 11 : i64} {
  func.func @_ca_kernel(%arg0: i32, %arg1: memref<2xi32, #tpu.memory_space<smem>>, %arg2: memref<1x16x128xf32, #tpu.memory_space<vmem>>, %arg3: memref<384x512xf32, #tpu.memory_space<vmem>>, %arg4: memref<1x1x512xf32, #tpu.memory_space<vmem>>, %arg5: memref<512x128xf32, #tpu.memory_space<vmem>>, %arg6: memref<1x128xf32, #tpu.memory_space<vmem>>, %arg7: memref<1x16x128xf32, #tpu.memory_space<vmem>>) attributes {dimension_semantics = [#tpu.dimension_semantics<parallel>], iteration_bounds = array<i64: 2>, scalar_prefetch = 1 : i64, scratch_operands = 0 : i64, tpu.core_type = #tpu.core_type<tc>, window_params = [{transform_indices = @transform_0, window_bounds = array<i64: 1, 16, 128>}, {pipeline_mode = #tpu.pipeline_mode<synchronous>, transform_indices = @transform_1, window_bounds = array<i64: 384, 512>}, {transform_indices = @transform_2, window_bounds = array<i64: 1, 1, 512>}, {pipeline_mode = #tpu.pipeline_mode<synchronous>, transform_indices = @transform_3, window_bounds = array<i64: 512, 128>}, {pipeline_mode = #tpu.pipeline_mode<synchronous>, transform_indices = @transform_4, window_bounds = array<i64: 1, 128>}, {transform_indices = @transform_5, window_bounds = array<i64: 1, 16, 128>}]} {
    %0 = arith.index_cast %arg0 : i32 to index
    %1 = memref.load %arg1[%0] : memref<2xi32, #tpu.memory_space<smem>>
    %c1_i32 = arith.constant 1 : i32
    %2 = arith.addi %1, %c1_i32 : i32
    %c7_i32 = arith.constant 7 : i32
    %3 = arith.minsi %2, %c7_i32 : i32
    %c1_i32_0 = arith.constant 1 : i32
    %4 = arith.cmpi sge, %1, %c1_i32_0 : i32
    %c0_i32 = arith.constant 0 : i32
    %5 = arith.select %4, %3, %c0_i32 : i32
    %6 = tpu.iota {dimensions = array<i32: 0>} : vector<16x128xi32>
    %7 = tpu.iota {dimensions = array<i32: 1>} : vector<16x128xi32>
    %c1_i32_1 = arith.constant 1 : i32
    %8 = vector.broadcast %c1_i32_1 : i32 to vector<16x128xi32>
    %9 = arith.cmpi sge, %6, %8 : vector<16x128xi32>
    %c14_i32 = arith.constant 14 : i32
    %10 = vector.broadcast %c14_i32 : i32 to vector<16x128xi32>
    %11 = arith.cmpi sle, %6, %10 : vector<16x128xi32>
    %c8_i32 = arith.constant 8 : i32
    %12 = vector.broadcast %c8_i32 : i32 to vector<16x128xi32>
    %13 = arith.cmpi sge, %7, %12 : vector<16x128xi32>
    %c120_i32 = arith.constant 120 : i32
    %14 = vector.broadcast %c120_i32 : i32 to vector<16x128xi32>
    %15 = arith.cmpi slt, %7, %14 : vector<16x128xi32>
    %c0 = arith.constant 0 : index
    %c0_2 = arith.constant 0 : index
    %c0_3 = arith.constant 0 : index
    %16 = vector.load %arg4[%c0, %c0_2, %c0_3] : memref<1x1x512xf32, #tpu.memory_space<vmem>>, vector<1x1x512xf32>
    %17 = vector.shape_cast %16 : vector<1x1x512xf32> to vector<1x512xf32>
    %c0_4 = arith.constant 0 : index
    %c0_5 = arith.constant 0 : index
    %18 = vector.load %arg6[%c0_4, %c0_5] : memref<1x128xf32, #tpu.memory_space<vmem>>, vector<1x128xf32>
    %c0_6 = arith.constant 0 : index
    %c0_7 = arith.constant 0 : index
    %c0_8 = arith.constant 0 : index
    %19 = vector.load %arg2[%c0_6, %c0_7, %c0_8] : memref<1x16x128xf32, #tpu.memory_space<vmem>>, vector<1x16x128xf32>
    %20 = vector.shape_cast %19 : vector<1x16x128xf32> to vector<16x128xf32>
    %c0_9 = arith.constant 0 : index
    %c0_10 = arith.constant 0 : index
    %c0_11 = arith.constant 0 : index
    %21 = vector.load %arg7[%c0_9, %c0_10, %c0_11] : memref<1x16x128xf32, #tpu.memory_space<vmem>>, vector<1x16x128xf32>
    %22 = vector.shape_cast %21 : vector<1x16x128xf32> to vector<16x128xf32>
    %23 = vector.shape_cast %20 : vector<16x128xf32> to vector<1x16x128xf32>
    tpu.vector_store %arg7[%c0_9, %c0_10, %c0_11], %23 {strides = array<i32>} : memref<1x16x128xf32, #tpu.memory_space<vmem>>, vector<1x16x128xf32>,
    %c0_i32_12 = arith.constant 0 : i32
    %24 = arith.subi %5, %c0_i32_12 : i32
    %c1_i32_13 = arith.constant 1 : i32
    %c1_i32_14 = arith.constant 1 : i32
    %25 = arith.subi %c1_i32_13, %c1_i32_14 : i32
    %26 = arith.addi %24, %25 : i32
    %c1_i32_15 = arith.constant 1 : i32
    %27 = arith.divsi %26, %c1_i32_15 : i32
    %c1_i32_16 = arith.constant 1 : i32
    %c0_i32_17 = arith.constant 0 : i32
    %c0_i32_18 = arith.constant 0 : i32
    %28 = arith.subi %27, %c0_i32_18 : i32
    %29 = arith.addi %c0_i32_18, %28 : i32
    %c1_i32_19 = arith.constant 1 : i32
    scf.for %arg8 = %c0_i32_18 to %29 step %c1_i32_19  : i32 {
      %30 = arith.muli %arg8, %c1_i32_16 : i32
      %31 = arith.addi %c0_i32_17, %30 : i32
      %c0_20 = arith.constant 0 : index
      %c0_21 = arith.constant 0 : index
      %c0_22 = arith.constant 0 : index
      %32 = vector.load %arg7[%c0_20, %c0_21, %c0_22] : memref<1x16x128xf32, #tpu.memory_space<vmem>>, vector<1x16x128xf32>
      %33 = vector.shape_cast %32 : vector<1x16x128xf32> to vector<16x128xf32>
      %c1_i32_23 = arith.constant 1 : i32
      %34 = tpu.dynamic_rotate %33 by %c1_i32_23 dim 0 : vector<16x128xf32>, i32 -> vector<16x128xf32>
      %cst = arith.constant 0.000000e+00 : f32
      %35 = vector.broadcast %cst : f32 to vector<16x128xf32>
      %36 = arith.select %9, %34, %35 : vector<16x128xi1>, vector<16x128xf32>
      %c15_i32 = arith.constant 15 : i32
      %37 = tpu.dynamic_rotate %33 by %c15_i32 dim 0 : vector<16x128xf32>, i32 -> vector<16x128xf32>
      %cst_24 = arith.constant 0.000000e+00 : f32
      %38 = vector.broadcast %cst_24 : f32 to vector<16x128xf32>
      %39 = arith.select %11, %37, %38 : vector<16x128xi1>, vector<16x128xf32>
      %cst_25 = arith.constant 2.000000e+00 : f32
      %40 = vector.broadcast %cst_25 : f32 to vector<16x128xf32>
      %41 = arith.mulf %40, %33 : vector<16x128xf32>
      %42 = arith.addf %36, %41 : vector<16x128xf32>
      %43 = arith.addf %42, %39 : vector<16x128xf32>
      %44 = arith.subf %39, %36 : vector<16x128xf32>
      %c120_i32_26 = arith.constant 120 : i32
      %45 = tpu.dynamic_rotate %43 by %c120_i32_26 dim 1 : vector<16x128xf32>, i32 -> vector<16x128xf32>
      %cst_27 = arith.constant 0.000000e+00 : f32
      %46 = vector.broadcast %cst_27 : f32 to vector<16x128xf32>
      %47 = arith.select %15, %45, %46 : vector<16x128xi1>, vector<16x128xf32>
      %c8_i32_28 = arith.constant 8 : i32
      %48 = tpu.dynamic_rotate %43 by %c8_i32_28 dim 1 : vector<16x128xf32>, i32 -> vector<16x128xf32>
      %cst_29 = arith.constant 0.000000e+00 : f32
      %49 = vector.broadcast %cst_29 : f32 to vector<16x128xf32>
      %50 = arith.select %13, %48, %49 : vector<16x128xi1>, vector<16x128xf32>
      %c120_i32_30 = arith.constant 120 : i32
      %51 = tpu.dynamic_rotate %44 by %c120_i32_30 dim 1 : vector<16x128xf32>, i32 -> vector<16x128xf32>
      %cst_31 = arith.constant 0.000000e+00 : f32
      %52 = vector.broadcast %cst_31 : f32 to vector<16x128xf32>
      %53 = arith.select %15, %51, %52 : vector<16x128xi1>, vector<16x128xf32>
      %c8_i32_32 = arith.constant 8 : i32
      %54 = tpu.dynamic_rotate %44 by %c8_i32_32 dim 1 : vector<16x128xf32>, i32 -> vector<16x128xf32>
      %cst_33 = arith.constant 0.000000e+00 : f32
      %55 = vector.broadcast %cst_33 : f32 to vector<16x128xf32>
      %56 = arith.select %13, %54, %55 : vector<16x128xi1>, vector<16x128xf32>
      %57 = arith.subf %47, %50 : vector<16x128xf32>
      %cst_34 = arith.constant 2.000000e+00 : f32
      %58 = vector.broadcast %cst_34 : f32 to vector<16x128xf32>
      %59 = arith.mulf %58, %44 : vector<16x128xf32>
      %60 = arith.addf %56, %59 : vector<16x128xf32>
      %61 = arith.addf %60, %53 : vector<16x128xf32>
      %62 = tpu.concatenate %33, %57, %61 in 1 : vector<16x128xf32>, vector<16x128xf32>, vector<16x128xf32> -> vector<16x384xf32>
      %c0_35 = arith.constant 0 : index
      %c0_36 = arith.constant 0 : index
      %63 = vector.load %arg3[%c0_35, %c0_36] : memref<384x512xf32, #tpu.memory_space<vmem>>, vector<384x512xf32>
      %cst_37 = arith.constant dense<0.000000e+00> : vector<16x512xf32>
      %64 = tpu.matmul %62, %63, %cst_37 {dimension_numbers = #tpu.dot_dimension_numbers<[1], [0], [0], [1], [0, 0, 1, 1], [], []>} : vector<16x384xf32>, vector<384x512xf32>, vector<16x512xf32> -> vector<16x512xf32>
      %65 = vector.broadcast %17 : vector<1x512xf32> to vector<16x512xf32>
      %66 = arith.addf %64, %65 : vector<16x512xf32>
      %cst_38 = arith.constant 0.000000e+00 : f32
      %67 = vector.broadcast %cst_38 : f32 to vector<16x512xf32>
      %68 = arith.maximumf %66, %67 : vector<16x512xf32>
      %c0_39 = arith.constant 0 : index
      %c0_40 = arith.constant 0 : index
      %69 = vector.load %arg5[%c0_39, %c0_40] : memref<512x128xf32, #tpu.memory_space<vmem>>, vector<512x128xf32>
      %cst_41 = arith.constant dense<0.000000e+00> : vector<16x128xf32>
      %70 = tpu.matmul %68, %69, %cst_41 {dimension_numbers = #tpu.dot_dimension_numbers<[1], [0], [0], [1], [0, 0, 1, 1], [], []>} : vector<16x512xf32>, vector<512x128xf32>, vector<16x128xf32> -> vector<16x128xf32>
      %71 = vector.broadcast %18 : vector<1x128xf32> to vector<16x128xf32>
      %72 = arith.addf %70, %71 : vector<16x128xf32>
      %73 = arith.addf %33, %72 : vector<16x128xf32>
      %c0_42 = arith.constant 0 : index
      %c0_43 = arith.constant 0 : index
      %c0_44 = arith.constant 0 : index
      %74 = vector.load %arg7[%c0_42, %c0_43, %c0_44] : memref<1x16x128xf32, #tpu.memory_space<vmem>>, vector<1x16x128xf32>
      %75 = vector.shape_cast %74 : vector<1x16x128xf32> to vector<16x128xf32>
      %76 = vector.shape_cast %73 : vector<16x128xf32> to vector<1x16x128xf32>
      tpu.vector_store %arg7[%c0_42, %c0_43, %c0_44], %76 {strides = array<i32>} : memref<1x16x128xf32, #tpu.memory_space<vmem>>, vector<1x16x128xf32>,
    }
    return
  }
  func.func @transform_0(%arg0: i32, %arg1: memref<2xi32, #tpu.memory_space<smem>>) -> (i32, i32, i32) {
    %c0_i32 = arith.constant 0 : i32
    %c0_i32_0 = arith.constant 0 : i32
    %c0_i32_1 = arith.constant 0 : i32
    return %arg0, %c0_i32, %c0_i32_0 : i32, i32, i32
  }
  func.func @transform_1(%arg0: i32, %arg1: memref<2xi32, #tpu.memory_space<smem>>) -> (i32, i32) {
    %c0_i32 = arith.constant 0 : i32
    %c0_i32_0 = arith.constant 0 : i32
    %c0_i32_1 = arith.constant 0 : i32
    return %c0_i32, %c0_i32_0 : i32, i32
  }
  func.func @transform_2(%arg0: i32, %arg1: memref<2xi32, #tpu.memory_space<smem>>) -> (i32, i32, i32) {
    %c0_i32 = arith.constant 0 : i32
    %c0_i32_0 = arith.constant 0 : i32
    %c0_i32_1 = arith.constant 0 : i32
    return %arg0, %c0_i32, %c0_i32_0 : i32, i32, i32
  }
  func.func @transform_3(%arg0: i32, %arg1: memref<2xi32, #tpu.memory_space<smem>>) -> (i32, i32) {
    %c0_i32 = arith.constant 0 : i32
    %c0_i32_0 = arith.constant 0 : i32
    %c0_i32_1 = arith.constant 0 : i32
    return %c0_i32, %c0_i32_0 : i32, i32
  }
  func.func @transform_4(%arg0: i32, %arg1: memref<2xi32, #tpu.memory_space<smem>>) -> (i32, i32) {
    %c0_i32 = arith.constant 0 : i32
    %c0_i32_0 = arith.constant 0 : i32
    %c0_i32_1 = arith.constant 0 : i32
    return %c0_i32, %c0_i32_0 : i32, i32
  }
  func.func @transform_5(%arg0: i32, %arg1: memref<2xi32, #tpu.memory_space<smem>>) -> (i32, i32, i32) {
    %c0_i32 = arith.constant 0 : i32
    %c0_i32_0 = arith.constant 0 : i32
    %c0_i32_1 = arith.constant 0 : i32
    return %arg0, %c0_i32, %c0_i32_0 : i32, i32, i32
  }
}

</mosaic_0001>

<bundles_post_ra>
// kernel: tpu_custom_call.1
= control target key start
LH: loop header
LB: loop body
LE: loop exit
PB: predicated region body
PF: predicated region fallthrough
CT: control target
= control target key end

     0   :  { %s2323_s0 = inlined_call_operand.hbm [shape: s32[2], index: 0, kind: input, shape index: {}]   ;;  %s2324_s1 = inlined_call_operand.hbm [shape: f32[2,16,128], index: 1, kind: input, shape index: {}]   ;;  %s2325_s2 = inlined_call_operand.hbm [shape: f32[384,512], index: 2, kind: input, shape index: {}]   ;;  %s2326_s3 = inlined_call_operand.vmem [shape: f32[2,1,512], index: 3, kind: input, shape index: {}]   ;;  %s2327_s4 = inlined_call_operand.hbm [shape: f32[512,128], index: 4, kind: input, shape index: {}]   ;;  %s2328_s5 = inlined_call_operand.vmem [shape: f32[1,128], index: 5, kind: input, shape index: {}]   ;;  %s2329_s6 = inlined_call_operand.hbm [shape: f32[2,16,128], index: 6, kind: output, shape index: {}]  }
   0x1   :  { %s1713_s23 = scalar_lea.hbm %s2323_s0, 16 }
   0x2   :  { %p1714_p0 = scmp.ne.s32.totalorder %s2323_s0, %s1713_s23  ;;  %p1717_p1 = scmp.lt.u32.totalorder %s1713_s23, %s2323_s0 }
   0x4   :  { %p1719_p2 = pnand %p1717_p1, %p1714_p0 }
   0x6   :  { %1722 = shalt.err (!%p1719_p2)  }
   0x7   :  { %s1891_s28 = smov [#allocation3]  }
   0x8   :  { %12 = dma.hbm_to_smem %s2323_s0, 16, %s1891_s28, [#allocation2] }
   0x9   :  { %1857 = dma.done.wait [#allocation2], 16 }
   0xa   :  { %1858 = vsyncadd [#allocation2], 4294967280 }
   0xb   :  { %14 = sfence }
   0xc   :  { %15 = vsyncpa [#allocation5], 0 }
   0xd   :  { %17 = vsyncpa [#allocation5 + $0x1], 0 }
   0xe   :  { %18 = vsyncpa [#allocation8], 0 }
   0xf   :  { %19 = vsyncpa [#allocation6], 0 }
  0x10   :  { %21 = vsyncpa [#allocation6 + $0x1], 0  ;;  %s1952_s7 = smov 0   ;;  %s1954_s8 = smov 0  }
  0x11   :  { %s1956_s9 = smov 0   ;;  %s1958_s10 = smov 0  }
  0x12 LB: > { %s1973_s0 = sadd.s32 4294967295, %s1885_s10   ;;  %s1255_s11 = sadd.s32 4294967294, %s1885_s10   ;;  %s1885_s10 = sphi %s1958_s10, %s2349_s10   ;;  %s1881_s9 = sphi %s1956_s9, %s2348_s9   ;;  %s1877_s8 = sphi %s1954_s8, %s2347_s8   ;;  %s1873_s7 = sphi %s1952_s7, %s2346_s7  }
  0x13   : > { %p47_p3 = scmp.ne.s32.totalorder %s1877_s8, %s1873_s7  ;;  %p2330_p4 = scmp.eq.s32.totalorder %s1973_s0, 0 }
  0x14   : > { %p166_p6 = scmp.eq.s32.totalorder %s1255_s11, 1  ;;  %p1256_p8 = scmp.ge.s32.totalorder %s1885_s10, 1 }
  0x15   : > { %p1982_p7 = por %p2330_p4, %p47_p3  ;;  %p173_p10 = scmp.lt.s32.totalorder %s1885_s10, 3 }
  0x16   : > { %p1987_p9 = por %p166_p6, %p47_p3  ;;  %s1892_s15 = smov [#allocation7]  }
  0x17   : > { %s2333_s12 = scalar_select %p1982_p7, 1, 0 }
  0x18   : > { %s2334_s13 = scalar_select %p1987_p9, 1, 0 }
  0x19   : > { %p1992_p11 = pnand %p1256_p8, %p173_p10  ;;  %s185_s16 = sshll.u32 %s1892_s15, 4  ;;  %s1996_s16 = int_to_ptr.vmem [resolvable:$true] %s185_s16 }
  0x1a   : > { %s1893_s18 = smov [#allocation9]   ;;  %s1723_s22 = scalar_lea.hbm %s2325_s2, 24576 }
  0x1b   : > { %p1638_p12 = pneg %p1992_p11  ;;  %s198_s19 = sshll.u32 %s1893_s18, 4  ;;  %s2007_s19 = int_to_ptr.vmem [resolvable:$true] %s198_s19 }
  0x1c   : > { %p1724_p1 = scmp.ne.s32.totalorder %s2325_s2, %s1723_s22  ;;  %p1730_p8 = scmp.lt.u32.totalorder %s1723_s22, %s2325_s2 }
  0x1d   : > { %p2003_p0 = pnand %p1638_p12, %p2330_p4 }
  0x1f   : > { %p1725_p2 = pneg %p2003_p0 }
  0x21   : > { %p1726_p3 = pnand %p1725_p2, %p1724_p1 }
  0x23   : > { %p1727_p6 = pneg %p1726_p3 }
  0x25   : > { %p1732_p10 = pnand %p1730_p8, %p1727_p6 }
  0x27   : > { %1735 = shalt.err (!%p1732_p10)
}
  0x28   : > { %s1736_s27 = scalar_lea.vmem %s1996_s16, 24576  ;;  %p1744_p5 = scmp.lt.s32.totalorder %s1996_s16, %s1996_s16 }
  0x29   : > { %p1737_p12 = scmp.ne.s32.totalorder %s1996_s16, %s1736_s27  ;;  %p1745_p1 = scmp.lt.s32.totalorder %s1736_s27, %s1736_s27 }
  0x2b   : > { %p1739_p13 = pnand %p1737_p12, %p1725_p2  ;;  %p1746_p3 = por %p1745_p1, %p1744_p5 }
  0x2d   : > { %p1740_p4 = pneg %p1739_p13 }
  0x2f   : > { %p1747_p9 = pnand %p1746_p3, %p1740_p4 }
  0x31   : > { %1750 = shalt.err (!%p1747_p9)
}
  0x32   : > { %s1894_s28 = smov 512   ;;  %s1895_s29 = smov 32  }
  0x33   : > { %1641 = dma.hbm_to_vmem [thread:$0]  (!%p2003_p0), %s2325_s2, 24576, %s1996_s16, [#allocation8], %s1894_s28, %s1894_s28, %s1895_s29  }
  0x34   : > { %s1751_s20 = scalar_lea.hbm %s2327_s4, 8192 }
  0x35   : > { %p1752_p5 = scmp.ne.s32.totalorder %s2327_s4, %s1751_s20  ;;  %p1758_p13 = scmp.lt.u32.totalorder %s1751_s20, %s2327_s4 }
  0x37   : > { %p1754_p4 = pnand %p1752_p5, %p1725_p2 }
  0x39   : > { %p1755_p9 = pneg %p1754_p4 }
  0x3b   : > { %p1760_p6 = pnand %p1758_p13, %p1755_p9 }
  0x3d   : > { %1763 = shalt.err (!%p1760_p6)
}
  0x3e   : > { %s1764_s16 = scalar_lea.vmem %s2007_s19, 8192  ;;  %p1772_p1 = scmp.lt.s32.totalorder %s2007_s19, %s2007_s19 }
  0x3f   : > { %p1765_p8 = scmp.ne.s32.totalorder %s2007_s19, %s1764_s16  ;;  %p1773_p3 = scmp.lt.s32.totalorder %s1764_s16, %s1764_s16 }
  0x41   : > { %p1767_p10 = pnand %p1765_p8, %p1725_p2  ;;  %p1774_p5 = por %p1773_p3, %p1772_p1 }
  0x43   : > { %p1768_p12 = pneg %p1767_p10 }
  0x45   : > { %p1775_p4 = pnand %p1774_p5, %p1768_p12 }
  0x47   : > { %1778 = shalt.err (!%p1775_p4)
}
  0x48   : > { %s1896_s25 = smov 128   ;;  %s1897_s26 = smov 8  }
  0x49   : > { %1644 = dma.hbm_to_vmem [thread:$0]  (!%p2003_p0), %s2327_s4, 8192, %s2007_s19, [#allocation8], %s1896_s25, %s1896_s25, %s1897_s26  }
  0x4a   : > { %s2065_s29 = sadd.s32 1, %s1885_s10   ;;  %s34_s11 = sadd.s32 1, %s1881_s9 }
  0x4b   : > { %s31_s30 = ssub.s32 %s1885_s10, %s2065_s29  ;;  %p41_p9 = scmp.ne.s32.totalorder %s1881_s9, %s1877_s8 }
  0x4c   : > { %p32_p2 = scmp.eq.s32.totalorder %s31_s30, 0  ;;  %p42_p13 = scmp.eq.s32.totalorder %s1885_s10, 0 }
  0x4d   : > { %p2337_p8 = scmp.eq.s32.totalorder %s1973_s0, 1  ;;  %p1655_p12 = scmp.lt.s32.totalorder %s1885_s10, 2 }
  0x4e   : > { %s2074_s15 = scalar_select %p32_p2, %s1881_s9, %s34_s11  }
  0x4f   : > { %p43_p6 = por %p42_p13, %p41_p9  ;;  %p2078_p10 = por %p2337_p8, %p41_p9 }
  0x50   : > { %s215_s18 = sand.u32 1, %s1881_s9   ;;  %s1276_s19 = sshll.u32 %s1885_s10, 8 }
  0x51   : > { %s2338_s17 = scalar_select %p2078_p10, 1, 0 }
  0x52   : > { %s1260_s20 = sshll.u32 %s215_s18, 4  ;;  %s2088_s23 = scalar_lea.hbm %s2324_s1, %s1276_s19 }
  0x53   : > { %s219_s24 = scalar_lea.vmem [#allocation4], %s1260_s20  ;;  %p2092_p0 = pnand %p1655_p12, %p43_p6 }
  0x54   : > { %s226_s16 = sshll.u32 %s219_s24, 4  ;;  %s2096_s28 = scalar_lea.sflag [#allocation5], %s215_s18  ;;  %s2090_s16 = int_to_ptr.vmem [resolvable:$true] %s226_s16 }
  0x55   : > { %s1779_s30 = scalar_lea.hbm %s2088_s23, 256  ;;  %p1781_p3 = pneg %p2092_p0 }
  0x56   : > { %p1780_p1 = scmp.ne.s32.totalorder %s2088_s23, %s1779_s30  ;;  %s1784_s19 = scalar_lea.hbm %s2324_s1, 512 }
  0x57   : > { %p1785_p2 = scmp.lt.u32.totalorder %s2088_s23, %s2324_s1  ;;  %p1786_p9 = scmp.lt.u32.totalorder %s1784_s19, %s1779_s30 }
  0x58   : > { %p1782_p5 = pnand %p1781_p3, %p1780_p1  ;;  %p1788_p6 = scmp.lt.u32.totalorder %s1779_s30, %s2088_s23 }
  0x59   : > { %p1787_p13 = por %p1786_p9, %p1785_p2 }
  0x5a   : > { %p1783_p4 = pneg %p1782_p5 }
  0x5b   : > { %p1789_p8 = por %p1788_p6, %p1787_p13 }
  0x5d   : > { %p1790_p12 = pnand %p1789_p8, %p1783_p4 }
  0x5f   : > { %1793 = shalt.err (!%p1790_p12)
}
  0x60   : > { %s1794_s18 = scalar_lea.vmem %s2090_s16, 256  ;;  %s1898_s24 = smov [#allocation4]  }
  0x61   : > { %p1795_p1 = scmp.ne.s32.totalorder %s2090_s16, %s1794_s18  ;;  %s1799_s11 = sshll.u32 %s1898_s24, 4  ;;  %s1800_s11 = int_to_ptr.vmem [resolvable:$false] %s1799_s11 }
  0x62   : > { %s1801_s20 = scalar_lea.vmem %s1800_s11, 512  ;;  %p1802_p7 = scmp.lt.s32.totalorder %s2090_s16, %s1800_s11 }
  0x63   : > { %p1797_p5 = pnand %p1795_p1, %p1781_p3  ;;  %p1803_p2 = scmp.lt.s32.totalorder %s1801_s20, %s1794_s18 }
  0x65   : > { %p1798_p10 = pneg %p1797_p5  ;;  %p1804_p9 = por %p1803_p2, %p1802_p7 }
  0x67   : > { %p1805_p13 = pnand %p1804_p9, %p1798_p10 }
  0x69   : > { %1808 = shalt.err (!%p1805_p13)
}
  0x6a   : > { %1648 = dma.hbm_to_vmem [thread:$0]  (!%p2092_p0), %s2088_s23, 256, %s2090_s16, %s2096_s28, %s1896_s25, %s1896_s25, %s1897_s26  }
  0x6b   : > { %245 = sbr.rel (%p1992_p11) target bundleno = 772 (0x304), region = 40  ;;  %s2130_s30 = sand.u32 (!%p1992_p11), 1, %s1877_s8  }
  0x6c   : > { %s1264_s19 = sshll.u32 (!%p1992_p11), %s2130_s30, 4  ;;  %s248_s21 = scalar_lea.sflag (!%p1992_p11), [#allocation5], %s2130_s30 }
  0x6d   : > { %s251_s22 = scalar_lea.vmem (!%p1992_p11), [#allocation4], %s1264_s19  ;;  %p2340_p7 = scmp.ne.s32.totalorder (!%p1992_p11), %s2333_s12, 0 }
  0x72   : > { %1860 = dma.done.wait (%p2340_p7), %s248_s21, 256  }
  0x73   : > { %1862 = vsyncadd (%p2340_p7), %s248_s21, 4294967040  ;;  %p2341_p10 = scmp.eq.s32.totalorder %s1973_s0, 0 }
  0x75   : > { %1864 = dma.done.wait (%p2341_p10), [#allocation8], 32768   ;;  %p2342_p0 = pmov %p2341_p10 }
  0x76   : > { %p290_p11 = scmp.lt.s32.totalorder %s1973_s0, 1  ;;  %v300_v0 = vlaneseq  ;;  %s294_s14 = sld [smem:[#allocation3 + %s1973_s0]]  ;;  %v2164_v5 = vld [vmem:[%s2328_s5] ss:$0 sm:$0xff]  ;;  %v313_v6 = vld [vmem:[%s251_s22] sm:$0xff] }
  0x77   : > { %1866 = vsyncadd (%p2342_p0), [#allocation8], 4294934528  ;;  %v314_v7 = vld [vmem:[%s251_s22 + $0x8] sm:$0xff]  ;;  %s2166_s24 = scalar_lea.vmem [#allocation10], %s1264_s19 }
  0x78   : > { %s291_s25 = scalar_select %p290_p11, %s1973_s0, 1  ;;  %v2145_v1 = vshrl.u32 %v300_v0, 7  ;;  %v2147_v2 = vand.u32 127, %v300_v0  ;;  %315 = vst [vmem:[%s2166_s24] sm:$0xff] %v313_v6  ;;  %316 = vst [vmem:[%s2166_s24 + $0x8] sm:$0xff] %v314_v7 }
  0x7a   : > { %s1268_s26 = sshll.u32 %s291_s25, 2  ;;  %v2150_v3 = vadd.s32 8, %v2145_v1  ;;  %vm305_vm0 = vcmp.ge.s32.totalorder %v2145_v1, 1  ;;  %vm309_vm1 = vcmp.ge.s32.totalorder %v2147_v2, 8  ;;  %vm310_vm2 = vcmp.lt.s32.totalorder %v2147_v2, 120 }
  0x7b   : > { %s293_s16 = scalar_lea.vmem %s2326_s3, %s1268_s26 }
  0x7c   : > { %vm308_vm3 = vcmp.le.s32.totalorder %v2150_v3, 14  ;;  %s295_s27 = sadd.s32 1, %s294_s14  ;;  %v2159_v4 = vld [vmem:[%s293_s16] sm:$0xf]  ;;  %p298_p4 = scmp.ge.s32.totalorder %s294_s14, 1 }
  0x7d   : > { %p296_p3 = scmp.lt.s32.totalorder %s295_s27, 7 }
  0x7f   : > { %s2351_s27 = smov (!%p296_p3, %s295_s27), 7 }
  0x80   : > { %s2353_s27 = smov (!%p298_p4, %s2351_s27), 0 }
  0x81   : > { %p1269_p6 = scmp.le.s32.totalorder %s2353_s27, 0 }
  0x82   : > { %s2173_s11 = smov (!%p1269_p6), 0  }
  0x83   : > { %1204 = sbr.rel (%p1269_p6) target bundleno = 746 (0x2ea), region = 97 }
  0x8a LB: >> { %v2179_v8 = vld [vmem:[%s2166_s24] sm:$0xff]  ;;  %v2182_v9 = vld [vmem:[%s2166_s24 + $0x8] sm:$0xff]  ;;  %vm327_vm4 = vcmp.lt.s32.totalorder %v2145_v1, 1  ;;  %vm334_vm5 = vcmp.lt.s32.totalorder %v2145_v1, 7  ;;  %s1899_s20 = smov 120   ;;  %s1900_s19 = smov 8   ;;  %s1889_s11 = sphi %s2173_s11, %s320_s11  }
  0x8b   : >> { %v325_v10 = vrot.slane %v2179_v8, 7  ;;  %v326_v11 = vrot.slane %v2182_v9, 7  ;;  %v332_v12 = vrot.slane %v2179_v8, 1  ;;  %v333_v13 = vrot.slane %v2182_v9, 1  ;;  %v380_v14 = vld [vmem:[#allocation7 + $0x8] sm:$0xff]  ;;  %v382_v19 = vld [vmem:[#allocation7 + $0x18] sm:$0xff] }
  0x8c   : >> { %v384_v15 = vld [vmem:[#allocation7 + $0x28] sm:$0xff]  ;;  %v339_v16 = vmul.f32 2.0, %v2179_v8  ;;  %v340_v17 = vmul.f32 2.0, %v2182_v9  ;;  %v386_v20 = vld [vmem:[#allocation7 + $0x38] sm:$0xff]  ;;  %v379_v21 = vld [vmem:[#allocation7] sm:$0xff]  ;;  %s320_s11 = sadd.s32 1, %s1889_s11  }
  0x8d   : >> { %v1354_v18 = vpack.c.bf16 %v384_v15, %v380_v14  ;;  %v329_v22 = vsel %vm327_vm4, %v326_v11, %v325_v10  ;;  %v335_v23 = vsel %vm334_vm5, %v332_v12, %v333_v13  ;;  %v2198_v24 = vsel %vm327_vm4, %v325_v10, %v326_v11  ;;  %v383_v26 = vld [vmem:[#allocation7 + $0x20] sm:$0xff]  ;;  %v381_v27 = vld [vmem:[#allocation7 + $0x10] sm:$0xff]  ;;  %v388_v33 = vld [vmem:[#allocation7 + $0x48] sm:$0xff]  ;;  %p319_p8 = scmp.ge.s32.totalorder %s320_s11, %s2353_s27 }
  0x8e   : >> { %v336_v25 = vsel %vm334_vm5, %v333_v13, %v332_v12  ;;  %v385_v28 = vld [vmem:[#allocation7 + $0x30] sm:$0xff]  ;;  %v330_v29 = vsel %vm305_vm0, %v329_v22, 0.0  ;;  %v342_v31 = vadd.f32 %v340_v17, %v2198_v24  ;;  %v1450_v32 = vpack.c.bf16 %v386_v20, %v382_v19  ;;  %v392_v34 = vld [vmem:[#allocation7 + $0x68] sm:$0xff]  ;;  %v390_v35 = vld [vmem:[#allocation7 + $0x58] sm:$0xff] }
  0x8f   : >> { %v2206_v30 = vsel %vm308_vm3, %v336_v25, 0.0  ;;  %1355 = vmatprep.subr.bf16.mxu0 %v1354_v18  ;;  %v341_v36 = vadd.f32 %v339_v16, %v330_v29  ;;  %v1356_v37 = vpack.c.bf16 %v383_v26, %v379_v21  ;;  %v394_v38 = vld [vmem:[#allocation7 + $0x78] sm:$0xff]  ;;  %v387_v39 = vld [vmem:[#allocation7 + $0x40] sm:$0xff]  ;;  %v1452_v42 = vpack.c.bf16 %v385_v28, %v381_v27  ;;  %v389_v45 = vld [vmem:[#allocation7 + $0x50] sm:$0xff] }
  0x90   : >> { %v391_v40 = vld [vmem:[#allocation7 + $0x60] sm:$0xff]  ;;  %v344_v41 = vadd.f32 %v342_v31, %v2206_v30  ;;  %1451 = vmatprep.subr.bf16.mxu1 %v1450_v32  ;;  %v1358_v43 = vpack.c.bf16 %v392_v34, %v388_v33  ;;  %v1454_v44 = vpack.c.bf16 %v394_v38, %v390_v35  ;;  %v393_v46 = vld [vmem:[#allocation7 + $0x70] sm:$0xff]  ;;  %v396_v47 = vld [vmem:[#allocation7 + $0x88] sm:$0xff]  ;;  %v2213_v11 = vsub.f32 %v335_v23, %v330_v29 }
  0x91   : >> { %v343_v48 = vadd.f32 %v341_v36, %v335_v23  ;;  %1357 = vmatpush1.bf16.msra.mxu0 %v1356_v37  ;;  %v1360_v49 = vpack.c.bf16 %v391_v40, %v387_v39  ;;  %v400_v50 = vld [vmem:[#allocation7 + $0xa8] sm:$0xff]  ;;  %v398_v51 = vld [vmem:[#allocation7 + $0x98] sm:$0xff]  ;;  %1453 = vmatpush1.bf16.msra.mxu1 %v1452_v42  ;;  %v1456_v53 = vpack.c.bf16 %v393_v46, %v389_v45  ;;  %v395_v54 = vld [vmem:[#allocation7 + $0x80] sm:$0xff] }
  0x92   : >> { %v402_v52 = vld [vmem:[#allocation7 + $0xb8] sm:$0xff]  ;;  %349 = vrot.lane.b32.xlu1 %v344_v41, %s1899_s20  ;;  %v399_v55 = vld [vmem:[#allocation7 + $0xa0] sm:$0xff]  ;;  %1359 = vmatprep.subr.bf16.mxu0 %v1358_v43  ;;  %v1362_v56 = vpack.c.bf16 %v400_v50, %v396_v47  ;;  %v397_v57 = vld [vmem:[#allocation7 + $0x90] sm:$0xff]  ;;  %v2220_v26 = vsub.f32 %v2206_v30, %v2198_v24 }
  0x93   : >> { %347 = vrot.lane.b32.xlu0 %v343_v48, %s1899_s20  ;;  %v401_v58 = vld [vmem:[#allocation7 + $0xb0] sm:$0xff]  ;;  %1455 = vmatprep.subr.bf16.mxu1 %v1454_v44  ;;  %v1458_v59 = vpack.c.bf16 %v402_v52, %v398_v51  ;;  %v404_v60 = vld [vmem:[#allocation7 + $0xc8] sm:$0xff]  ;;  %v1364_v62 = vpack.c.bf16 %v399_v55, %v395_v54  ;;  %v406_v63 = vld [vmem:[#allocation7 + $0xd8] sm:$0xff] }
  0x94   : >> { %v408_v61 = vld [vmem:[#allocation7 + $0xe8] sm:$0xff]  ;;  %v410_v0 = vld [vmem:[#allocation7 + $0xf8] sm:$0xff]  ;;  %v1460_v6 = vpack.c.bf16 %v401_v58, %v397_v57  ;;  %v403_v7 = vld [vmem:[#allocation7 + $0xc0] sm:$0xff] }
  0x95   : >> { %1361 = vmatpush1.bf16.msra.mxu0 %v1360_v49  ;;  %1457 = vmatpush1.bf16.msra.mxu1 %v1456_v53  ;;  %v407_v10 = vld [vmem:[#allocation7 + $0xe0] sm:$0xff]  ;;  %v1366_v12 = vpack.c.bf16 %v408_v61, %v404_v60  ;;  %v405_v13 = vld [vmem:[#allocation7 + $0xd0] sm:$0xff]  ;;  %v1462_v15 = vpack.c.bf16 %v410_v0, %v406_v63  ;;  %v412_v16 = vld [vmem:[#allocation7 + $0x108] sm:$0xff] }
  0x96   : >> { %355 = vrot.lane.b32.xlu1 %v344_v41, %s1900_s19  ;;  %1363 = vmatprep.subr.bf16.mxu0 %v1362_v56  ;;  %v409_v14 = vld [vmem:[#allocation7 + $0xf0] sm:$0xff]  ;;  %v416_v17 = vld [vmem:[#allocation7 + $0x128] sm:$0xff]  ;;  %v1368_v18 = vpack.c.bf16 %v407_v10, %v403_v7  ;;  %v414_v19 = vld [vmem:[#allocation7 + $0x118] sm:$0xff] }
  0x97   : >> { %353 = vrot.lane.b32.xlu0 %v343_v48, %s1900_s19  ;;  %1459 = vmatprep.subr.bf16.mxu1 %v1458_v59  ;;  %v418_v20 = vld [vmem:[#allocation7 + $0x138] sm:$0xff]  ;;  %v1464_v21 = vpack.c.bf16 %v409_v14, %v405_v13  ;;  %v411_v22 = vld [vmem:[#allocation7 + $0x100] sm:$0xff]  ;;  %v413_v25 = vld [vmem:[#allocation7 + $0x110] sm:$0xff]  ;;  %v1370_v27 = vpack.c.bf16 %v416_v17, %v412_v16 }
  0x98   : >> { %v415_v23 = vld [vmem:[#allocation7 + $0x120] sm:$0xff]  ;;  %v417_v28 = vld [vmem:[#allocation7 + $0x130] sm:$0xff]  ;;  %v420_v29 = vld [vmem:[#allocation7 + $0x148] sm:$0xff]  ;;  %v1466_v32 = vpack.c.bf16 %v418_v20, %v414_v19 }
  0x99   : >> { %1365 = vmatpush1.bf16.msra.mxu0 %v1364_v62  ;;  %1461 = vmatpush1.bf16.msra.mxu1 %v1460_v6  ;;  %v424_v31 = vld [vmem:[#allocation7 + $0x168] sm:$0xff]  ;;  %v422_v33 = vld [vmem:[#allocation7 + $0x158] sm:$0xff]  ;;  %v1372_v35 = vpack.c.bf16 %v415_v23, %v411_v22  ;;  %v1468_v24 = vpack.c.bf16 %v417_v28, %v413_v25  ;;  %v419_v36 = vld [vmem:[#allocation7 + $0x140] sm:$0xff] }
  0x9a   : >> { %359 = vrot.lane.b32.xlu1 %v2213_v11, %s1899_s20  ;;  %1367 = vmatprep.subr.bf16.mxu0 %v1366_v12  ;;  %v426_v34 = vld [vmem:[#allocation7 + $0x178] sm:$0xff]  ;;  %v1374_v30 = vpack.c.bf16 %v424_v31, %v420_v29  ;;  %v423_v37 = vld [vmem:[#allocation7 + $0x160] sm:$0xff]  ;;  %v421_v38 = vld [vmem:[#allocation7 + $0x150] sm:$0xff] }
  0x9b   : >> { %365 = vrot.lane.b32.xlu0 %v2213_v11, %s1900_s19  ;;  %1463 = vmatprep.subr.bf16.mxu1 %v1462_v15  ;;  %v1470_v39 = vpack.c.bf16 %v426_v34, %v422_v33  ;;  %v425_v40 = vld [vmem:[#allocation7 + $0x170] sm:$0xff]  ;;  %v428_v41 = vld [vmem:[#allocation7 + $0x188] sm:$0xff]  ;;  %v430_v43 = vld [vmem:[#allocation7 + $0x198] sm:$0xff]  ;;  %v1376_v45 = vpack.c.bf16 %v423_v37, %v419_v36 }
  0x9c   : >> { %v432_v42 = vld [vmem:[#allocation7 + $0x1a8] sm:$0xff]  ;;  %v434_v44 = vld [vmem:[#allocation7 + $0x1b8] sm:$0xff]  ;;  %v1472_v46 = vpack.c.bf16 %v425_v40, %v421_v38  ;;  %v427_v48 = vld [vmem:[#allocation7 + $0x180] sm:$0xff] }
  0x9d   : >> { %1369 = vmatpush1.bf16.msra.mxu0 %v1368_v18  ;;  %1465 = vmatpush1.bf16.msra.mxu1 %v1464_v21  ;;  %v1378_v47 = vpack.c.bf16 %v432_v42, %v428_v41  ;;  %v431_v49 = vld [vmem:[#allocation7 + $0x1a0] sm:$0xff]  ;;  %v429_v50 = vld [vmem:[#allocation7 + $0x190] sm:$0xff]  ;;  %v1474_v51 = vpack.c.bf16 %v434_v44, %v430_v43  ;;  %v436_v53 = vld [vmem:[#allocation7 + $0x1c8] sm:$0xff] }
  0x9e   : >> { %361 = vrot.lane.b32.xlu1 %v2220_v26, %s1899_s20  ;;  %1371 = vmatprep.subr.bf16.mxu0 %v1370_v27  ;;  %v433_v52 = vld [vmem:[#allocation7 + $0x1b0] sm:$0xff]  ;;  %v440_v54 = vld [vmem:[#allocation7 + $0x1e8] sm:$0xff]  ;;  %v438_v55 = vld [vmem:[#allocation7 + $0x1d8] sm:$0xff]  ;;  %v1380_v57 = vpack.c.bf16 %v431_v49, %v427_v48 }
  0x9f   : >> { %367 = vrot.lane.b32.xlu0 %v2220_v26, %s1900_s19  ;;  %1467 = vmatprep.subr.bf16.mxu1 %v1466_v32  ;;  %v442_v56 = vld [vmem:[#allocation7 + $0x1f8] sm:$0xff]  ;;  %v1476_v58 = vpack.c.bf16 %v433_v52, %v429_v50  ;;  %v1382_v59 = vpack.c.bf16 %v440_v54, %v436_v53  ;;  %v435_v60 = vld [vmem:[#allocation7 + $0x1c0] sm:$0xff]  ;;  %v437_v62 = vld [vmem:[#allocation7 + $0x1d0] sm:$0xff] }
  0xa0   : >> { %v439_v61 = vld [vmem:[#allocation7 + $0x1e0] sm:$0xff]  ;;  %v1478_v63 = vpack.c.bf16 %v442_v56, %v438_v55  ;;  %v441_v0 = vld [vmem:[#allocation7 + $0x1f0] sm:$0xff]  ;;  %v444_v6 = vld [vmem:[#allocation7 + $0x208] sm:$0xff] }
  0xa1   : >> { %1373 = vmatpush1.bf16.msra.mxu0 %v1372_v35  ;;  %1469 = vmatpush1.bf16.msra.mxu1 %v1468_v24  ;;  %v448_v7 = vld [vmem:[#allocation7 + $0x228] sm:$0xff]  ;;  %v446_v10 = vld [vmem:[#allocation7 + $0x218] sm:$0xff]  ;;  %v1384_v13 = vpack.c.bf16 %v439_v61, %v435_v60  ;;  %v1480_v14 = vpack.c.bf16 %v441_v0, %v437_v62  ;;  %v443_v16 = vld [vmem:[#allocation7 + $0x200] sm:$0xff] }
  0xa2   : >> { %1375 = vmatprep.subr.bf16.mxu0 %v1374_v30  ;;  %1471 = vmatprep.subr.bf16.mxu1 %v1470_v39  ;;  %v450_v12 = vld [vmem:[#allocation7 + $0x238] sm:$0xff]  ;;  %v1386_v15 = vpack.c.bf16 %v448_v7, %v444_v6  ;;  %v447_v17 = vld [vmem:[#allocation7 + $0x220] sm:$0xff]  ;;  %v445_v18 = vld [vmem:[#allocation7 + $0x210] sm:$0xff] }
  0xa3   : >> { %v1482_v19 = vpack.c.bf16 %v450_v12, %v446_v10  ;;  %v449_v20 = vld [vmem:[#allocation7 + $0x230] sm:$0xff]  ;;  %v452_v21 = vld [vmem:[#allocation7 + $0x248] sm:$0xff]  ;;  %v454_v23 = vld [vmem:[#allocation7 + $0x258] sm:$0xff]  ;;  %v1388_v27 = vpack.c.bf16 %v447_v17, %v443_v16 }
  0xa4   : >> { %v456_v22 = vld [vmem:[#allocation7 + $0x268] sm:$0xff]  ;;  %v458_v25 = vld [vmem:[#allocation7 + $0x278] sm:$0xff]  ;;  %v1484_v28 = vpack.c.bf16 %v449_v20, %v445_v18  ;;  %v451_v31 = vld [vmem:[#allocation7 + $0x240] sm:$0xff] }
  0xa5   : >> { %1377 = vmatpush1.bf16.msra.mxu0 %v1376_v45  ;;  %1473 = vmatpush1.bf16.msra.mxu1 %v1472_v46  ;;  %v1390_v29 = vpack.c.bf16 %v456_v22, %v452_v21  ;;  %v455_v32 = vld [vmem:[#allocation7 + $0x260] sm:$0xff]  ;;  %v453_v33 = vld [vmem:[#allocation7 + $0x250] sm:$0xff]  ;;  %v1486_v34 = vpack.c.bf16 %v458_v25, %v454_v23  ;;  %v460_v24 = vld [vmem:[#allocation7 + $0x288] sm:$0xff] }
  0xa6   : >> { %1379 = vmatprep.subr.bf16.mxu0 %v1378_v47  ;;  %1475 = vmatprep.subr.bf16.mxu1 %v1474_v51  ;;  %v457_v35 = vld [vmem:[#allocation7 + $0x270] sm:$0xff]  ;;  %v464_v30 = vld [vmem:[#allocation7 + $0x2a8] sm:$0xff]  ;;  %v462_v36 = vld [vmem:[#allocation7 + $0x298] sm:$0xff]  ;;  %v1392_v38 = vpack.c.bf16 %v455_v32, %v451_v31 }
  0xa7   : >> { %v466_v37 = vld [vmem:[#allocation7 + $0x2b8] sm:$0xff]  ;;  %v1488_v39 = vpack.c.bf16 %v457_v35, %v453_v33  ;;  %v1394_v40 = vpack.c.bf16 %v464_v30, %v460_v24  ;;  %v459_v41 = vld [vmem:[#allocation7 + $0x280] sm:$0xff]  ;;  %v461_v43 = vld [vmem:[#allocation7 + $0x290] sm:$0xff] }
  0xa8   : >> { %v463_v42 = vld [vmem:[#allocation7 + $0x2a0] sm:$0xff]  ;;  %v1490_v44 = vpack.c.bf16 %v466_v37, %v462_v36  ;;  %v465_v45 = vld [vmem:[#allocation7 + $0x2b0] sm:$0xff]  ;;  %v468_v46 = vld [vmem:[#allocation7 + $0x2c8] sm:$0xff] }
  0xa9   : >> { %1381 = vmatpush1.bf16.msra.mxu0 %v1380_v57  ;;  %1477 = vmatpush1.bf16.msra.mxu1 %v1476_v58  ;;  %v472_v47 = vld [vmem:[#allocation7 + $0x2e8] sm:$0xff]  ;;  %v470_v48 = vld [vmem:[#allocation7 + $0x2d8] sm:$0xff]  ;;  %v1396_v50 = vpack.c.bf16 %v463_v42, %v459_v41  ;;  %v1492_v51 = vpack.c.bf16 %v465_v45, %v461_v43  ;;  %v467_v53 = vld [vmem:[#allocation7 + $0x2c0] sm:$0xff] }
  0xaa   : >> { %1383 = vmatprep.subr.bf16.mxu0 %v1382_v59  ;;  %1479 = vmatprep.subr.bf16.mxu1 %v1478_v63  ;;  %v474_v49 = vld [vmem:[#allocation7 + $0x2f8] sm:$0xff]  ;;  %v1398_v52 = vpack.c.bf16 %v472_v47, %v468_v46  ;;  %v471_v54 = vld [vmem:[#allocation7 + $0x2e0] sm:$0xff]  ;;  %v469_v55 = vld [vmem:[#allocation7 + $0x2d0] sm:$0xff] }
  0xab   : >> { %v1494_v56 = vpack.c.bf16 %v474_v49, %v470_v48  ;;  %v473_v57 = vld [vmem:[#allocation7 + $0x2f0] sm:$0xff]  ;;  %v476_v58 = vld [vmem:[#allocation7 + $0x308] sm:$0xff]  ;;  %v478_v60 = vld [vmem:[#allocation7 + $0x318] sm:$0xff]  ;;  %v1400_v62 = vpack.c.bf16 %v471_v54, %v467_v53 }
  0xac   : >> { %v480_v59 = vld [vmem:[#allocation7 + $0x328] sm:$0xff]  ;;  %v482_v61 = vld [vmem:[#allocation7 + $0x338] sm:$0xff]  ;;  %v1496_v63 = vpack.c.bf16 %v473_v57, %v469_v55  ;;  %v475_v6 = vld [vmem:[#allocation7 + $0x300] sm:$0xff] }
  0xad   : >> { %1385 = vmatpush1.bf16.msra.mxu0 %v1384_v13  ;;  %1481 = vmatpush1.bf16.msra.mxu1 %v1480_v14  ;;  %v1402_v0 = vpack.c.bf16 %v480_v59, %v476_v58  ;;  %v479_v7 = vld [vmem:[#allocation7 + $0x320] sm:$0xff]  ;;  %v477_v10 = vld [vmem:[#allocation7 + $0x310] sm:$0xff]  ;;  %v1498_v12 = vpack.c.bf16 %v482_v61, %v478_v60  ;;  %v484_v14 = vld [vmem:[#allocation7 + $0x348] sm:$0xff] }
  0xae   : >> { %1387 = vmatprep.subr.bf16.mxu0 %v1386_v15  ;;  %1483 = vmatprep.subr.bf16.mxu1 %v1482_v19  ;;  %v481_v13 = vld [vmem:[#allocation7 + $0x330] sm:$0xff]  ;;  %v488_v15 = vld [vmem:[#allocation7 + $0x368] sm:$0xff]  ;;  %v486_v16 = vld [vmem:[#allocation7 + $0x358] sm:$0xff]  ;;  %v1404_v18 = vpack.c.bf16 %v479_v7, %v475_v6 }
  0xaf   : >> { %v490_v17 = vld [vmem:[#allocation7 + $0x378] sm:$0xff]  ;;  %v1500_v19 = vpack.c.bf16 %v481_v13, %v477_v10  ;;  %v1406_v20 = vpack.c.bf16 %v488_v15, %v484_v14  ;;  %v483_v21 = vld [vmem:[#allocation7 + $0x340] sm:$0xff]  ;;  %v485_v23 = vld [vmem:[#allocation7 + $0x350] sm:$0xff] }
  0xb0   : >> { %v487_v22 = vld [vmem:[#allocation7 + $0x360] sm:$0xff]  ;;  %v1502_v25 = vpack.c.bf16 %v490_v17, %v486_v16  ;;  %v494_v31 = vld [vmem:[#allocation7 + $0x398] sm:$0xff]  ;;  %v493_v36 = vld [vmem:[#allocation7 + $0x390] sm:$0xff] }
  0xb1   : >> { %1389 = vmatpush1.bf16.msra.mxu0 %v1388_v27  ;;  %1485 = vmatpush1.bf16.msra.mxu1 %v1484_v28  ;;  %v489_v27 = vld [vmem:[#allocation7 + $0x370] sm:$0xff]  ;;  %v492_v28 = vld [vmem:[#allocation7 + $0x388] sm:$0xff]  ;;  %v498_v32 = vld [vmem:[#allocation7 + $0x3b8] sm:$0xff]  ;;  %v1408_v33 = vpack.c.bf16 %v487_v22, %v483_v21 }
  0xb2   : >> { %1391 = vmatprep.subr.bf16.mxu0 %v1390_v29  ;;  %1487 = vmatprep.subr.bf16.mxu1 %v1486_v34  ;;  %v496_v29 = vld [vmem:[#allocation7 + $0x3a8] sm:$0xff]  ;;  %v1504_v34 = vpack.c.bf16 %v489_v27, %v485_v23  ;;  %v491_v24 = vld [vmem:[#allocation7 + $0x380] sm:$0xff]  ;;  %v1506_v37 = vpack.c.bf16 %v498_v32, %v494_v31  ;;  %v502_v41 = vld [vmem:[#allocation7 + $0x3d8] sm:$0xff] }
  0xb3   : >> { %v1410_v35 = vpack.c.bf16 %v496_v29, %v492_v28  ;;  %v495_v30 = vld [vmem:[#allocation7 + $0x3a0] sm:$0xff]  ;;  %v506_v42 = vld [vmem:[#allocation7 + $0x3f8] sm:$0xff]  ;;  %v501_v48 = vld [vmem:[#allocation7 + $0x3d0] sm:$0xff] }
  0xb4   : >> { %v1412_v43 = vpack.c.bf16 %v495_v30, %v491_v24  ;;  %v499_v46 = vld [vmem:[#allocation7 + $0x3c0] sm:$0xff]  ;;  %v1510_v49 = vpack.c.bf16 %v506_v42, %v502_v41  ;;  %v510_v53 = vld [vmem:[#allocation7 + $0x418] sm:$0xff]  ;;  %v516_v6 = vld [vmem:[#allocation7 + $0x448] sm:$0xff] }
  0xb5   : >> { %1393 = vmatpush1.bf16.msra.mxu0 %v1392_v38  ;;  %1489 = vmatpush1.bf16.msra.mxu1 %v1488_v39  ;;  %v497_v38 = vld [vmem:[#allocation7 + $0x3b0] sm:$0xff]  ;;  %v500_v39 = vld [vmem:[#allocation7 + $0x3c8] sm:$0xff]  ;;  %v503_v47 = vld [vmem:[#allocation7 + $0x3e0] sm:$0xff] }
  0xb6   : >> { %1395 = vmatprep.subr.bf16.mxu0 %v1394_v40  ;;  %1491 = vmatprep.subr.bf16.mxu1 %v1490_v44  ;;  %v504_v40 = vld [vmem:[#allocation7 + $0x3e8] sm:$0xff]  ;;  %v1508_v44 = vpack.c.bf16 %v497_v38, %v493_v36  ;;  %v514_v54 = vld [vmem:[#allocation7 + $0x438] sm:$0xff]  ;;  %v1416_v55 = vpack.c.bf16 %v503_v47, %v499_v46  ;;  %v507_v61 = vld [vmem:[#allocation7 + $0x400] sm:$0xff] }
  0xb7   : >> { %v1414_v45 = vpack.c.bf16 %v504_v40, %v500_v39  ;;  %v1514_v58 = vpack.c.bf16 %v514_v54, %v510_v53  ;;  %v518_v13 = vld [vmem:[#allocation7 + $0x458] sm:$0xff]  ;;  %v515_v22 = vld [vmem:[#allocation7 + $0x440] sm:$0xff]  ;;  %v517_v28 = vld [vmem:[#allocation7 + $0x450] sm:$0xff] }
  0xb8   : >> { %v522_v14 = vld [vmem:[#allocation7 + $0x478] sm:$0xff]  ;;  %v519_v23 = vld [vmem:[#allocation7 + $0x460] sm:$0xff]  ;;  %v521_v29 = vld [vmem:[#allocation7 + $0x470] sm:$0xff] }
  0xb9   : >> { %1397 = vmatpush1.bf16.msra.mxu0 %v1396_v50  ;;  %1493 = vmatpush1.bf16.msra.mxu1 %v1492_v51  ;;  %v505_v50 = vld [vmem:[#allocation7 + $0x3f0] sm:$0xff]  ;;  %v508_v51 = vld [vmem:[#allocation7 + $0x408] sm:$0xff]  ;;  %v1518_v27 = vpack.c.bf16 %v522_v14, %v518_v13  ;;  %v1424_v24 = vpack.c.bf16 %v519_v23, %v515_v22  ;;  %v1520_v30 = vpack.c.bf16 %v521_v29, %v517_v28  ;;  %v523_v36 = vld [vmem:[#allocation7 + $0x480] sm:$0xff] }
  0xba   : >> { %1399 = vmatprep.subr.bf16.mxu0 %v1398_v52  ;;  %1495 = vmatprep.subr.bf16.mxu1 %v1494_v56  ;;  %v512_v52 = vld [vmem:[#allocation7 + $0x428] sm:$0xff]  ;;  %v1512_v56 = vpack.c.bf16 %v505_v50, %v501_v48  ;;  %v525_v40 = vld [vmem:[#allocation7 + $0x490] sm:$0xff]  ;;  %v531_v47 = vld [vmem:[#allocation7 + $0x4c0] sm:$0xff] }
  0xbb   : >> { %v1418_v57 = vpack.c.bf16 %v512_v52, %v508_v51  ;;  %v524_v31 = vld [vmem:[#allocation7 + $0x488] sm:$0xff]  ;;  %v529_v41 = vld [vmem:[#allocation7 + $0x4b0] sm:$0xff]  ;;  %v535_v48 = vld [vmem:[#allocation7 + $0x4e0] sm:$0xff] }
  0xbc   : >> { %v528_v32 = vld [vmem:[#allocation7 + $0x4a8] sm:$0xff]  ;;  %v1524_v46 = vpack.c.bf16 %v529_v41, %v525_v40  ;;  %v533_v51 = vld [vmem:[#allocation7 + $0x4d0] sm:$0xff]  ;;  %v558_v23 = vld [vmem:[#allocation7 + $0x598] sm:$0xff] }
  0xbd   : >> { %1401 = vmatpush1.bf16.msra.mxu0 %v1400_v62  ;;  %1497 = vmatpush1.bf16.msra.mxu1 %v1496_v63  ;;  %v511_v62 = vld [vmem:[#allocation7 + $0x420] sm:$0xff]  ;;  %v509_v63 = vld [vmem:[#allocation7 + $0x410] sm:$0xff]  ;;  %v1426_v38 = vpack.c.bf16 %v528_v32, %v524_v31  ;;  %v532_v42 = vld [vmem:[#allocation7 + $0x4c8] sm:$0xff] }
  0xbe   : >> { %1403 = vmatprep.subr.bf16.mxu0 %v1402_v0  ;;  %1499 = vmatprep.subr.bf16.mxu1 %v1498_v12  ;;  %v513_v0 = vld [vmem:[#allocation7 + $0x430] sm:$0xff]  ;;  %v520_v12 = vld [vmem:[#allocation7 + $0x468] sm:$0xff]  ;;  %v555_v31 = vld [vmem:[#allocation7 + $0x580] sm:$0xff] }
  0xbf   : >> { %v1516_v21 = vpack.c.bf16 %v513_v0, %v509_v63  ;;  %v537_v52 = vld [vmem:[#allocation7 + $0x4f0] sm:$0xff]  ;;  %v540_v53 = vld [vmem:[#allocation7 + $0x508] sm:$0xff]  ;;  %v559_v32 = vld [vmem:[#allocation7 + $0x5a0] sm:$0xff] }
  0xc0   : >> { %v544_v54 = vld [vmem:[#allocation7 + $0x528] sm:$0xff]  ;;  %v541_v63 = vld [vmem:[#allocation7 + $0x510] sm:$0xff]  ;;  %v1444_v41 = vpack.c.bf16 %v559_v32, %v555_v31 }
  0xc1   : >> { %1405 = vmatpush1.bf16.msra.mxu0 %v1404_v18  ;;  %1501 = vmatpush1.bf16.msra.mxu1 %v1500_v19  ;;  %v545_v0 = vld [vmem:[#allocation7 + $0x530] sm:$0xff]  ;;  %v560_v22 = vld [vmem:[#allocation7 + $0x5a8] sm:$0xff] }
  0xc2   : >> { %1407 = vmatprep.subr.bf16.mxu0 %v1406_v20  ;;  %1503 = vmatprep.subr.bf16.mxu1 %v1502_v25  ;;  %v1420_v20 = vpack.c.bf16 %v511_v62, %v507_v61  ;;  %v1422_v25 = vpack.c.bf16 %v520_v12, %v516_v6  ;;  %v1434_v61 = vpack.c.bf16 %v544_v54, %v540_v53  ;;  %v548_v6 = vld [vmem:[#allocation7 + $0x548] sm:$0xff]  ;;  %v554_v12 = vld [vmem:[#allocation7 + $0x578] sm:$0xff]  ;;  %v374_v54 = vmul.f32 2.0, %v2220_v26  ;;  %v926_v26 = vld [vmem:[#allocation9 + $0x90] sm:$0xff] }
  0xc3   : >> { %v1532_v14 = vpack.c.bf16 %v545_v0, %v541_v63  ;;  %v909_v63 = vld [vmem:[#allocation9 + $0x8] sm:$0xff]  ;;  %v940_v0 = vld [vmem:[#allocation9 + $0x100] sm:$0xff] }
  0xc4   : >> { %v961_v31 = vld [vmem:[#allocation9 + $0x1a8] sm:$0xff] }
  0xc5   : >> { %1409 = vmatpush1.bf16.msra.mxu0 %v1408_v33  ;;  %1505 = vmatpush1.bf16.msra.mxu1 %v1504_v34  ;;  %v526_v33 = vld [vmem:[#allocation7 + $0x498] sm:$0xff] }
  0xc6   : >> { %1411 = vmatprep.subr.bf16.mxu0 %v1410_v35  ;;  %1507 = vmatprep.subr.bf16.mxu1 %v1506_v37  ;;  %v530_v34 = vld [vmem:[#allocation7 + $0x4b8] sm:$0xff]  ;;  %v527_v37 = vld [vmem:[#allocation7 + $0x4a0] sm:$0xff] }
  0xc7   : >> { %v1522_v39 = vpack.c.bf16 %v530_v34, %v526_v33 }
  0xc9   : >> { %1413 = vmatpush1.bf16.msra.mxu0 %v1412_v43  ;;  %1509 = vmatpush1.bf16.msra.mxu1 %v1508_v44  ;;  %v536_v43 = vld [vmem:[#allocation7 + $0x4e8] sm:$0xff]  ;;  %v534_v44 = vld [vmem:[#allocation7 + $0x4d8] sm:$0xff] }
  0xca   : >> { %1415 = vmatprep.subr.bf16.mxu0 %v1414_v45  ;;  %1511 = vmatprep.subr.bf16.mxu1 %v1510_v49  ;;  %v538_v45 = vld [vmem:[#allocation7 + $0x4f8] sm:$0xff]  ;;  %v1430_v49 = vpack.c.bf16 %v536_v43, %v532_v42 }
  0xcb   : >> { %v1526_v50 = vpack.c.bf16 %v538_v45, %v534_v44  ;;  %v563_v44 = vld [vmem:[#allocation7 + $0x5c0] sm:$0xff] }
  0xcc   : >> { %v567_v45 = vld [vmem:[#allocation7 + $0x5e0] sm:$0xff] }
  0xcd   : >> { %1417 = vmatpush1.bf16.msra.mxu0 %v1416_v55  ;;  %1513 = vmatpush1.bf16.msra.mxu1 %v1512_v56  ;;  %v542_v55 = vld [vmem:[#allocation7 + $0x518] sm:$0xff] }
  0xce   : >> { %1419 = vmatprep.subr.bf16.mxu0 %v1418_v57  ;;  %1515 = vmatprep.subr.bf16.mxu1 %v1514_v58  ;;  %v546_v56 = vld [vmem:[#allocation7 + $0x538] sm:$0xff]  ;;  %v1901_v57 = vmov 0.0   ;;  %v1528_v58 = vpack.c.bf16 %v537_v52, %v533_v51  ;;  %v925_v51 = vld [vmem:[#allocation9 + $0x88] sm:$0xff] }
  0xcf   : >> { %v1530_v62 = vpack.c.bf16 %v546_v56, %v542_v55  ;;  %v957_v52 = vld [vmem:[#allocation9 + $0x188] sm:$0xff]  ;;  %v1448_v56 = vpack.c.bf16 %v567_v45, %v563_v44  ;;  %v915_v44 = vld [vmem:[#allocation9 + $0x38] sm:$0xff] }
 0x104   : >> { %v350_v59 = vpop.permute.xlu1 %349 }
 0x105   : >> { %v348_v60 = vpop.permute.xlu0 %347  ;;  %v352_v17 = vsel %vm310_vm2, %v350_v59, 0.0  ;;  %v539_v59 = vld [vmem:[#allocation7 + $0x500] sm:$0xff] }
 0x106   : >> { %v351_v15 = vsel %vm310_vm2, %v348_v60, 0.0  ;;  %v543_v60 = vld [vmem:[#allocation7 + $0x520] sm:$0xff] }
 0x107   : >> { %v1436_v13 = vpack.c.bf16 %v543_v60, %v539_v59 }
 0x108   : >> { %v356_v7 = vpop.permute.xlu1 %355 }
 0x109   : >> { %v354_v10 = vpop.permute.xlu0 %353  ;;  %v358_v18 = vsel %vm309_vm1, %v356_v7, 0.0  ;;  %v552_v7 = vld [vmem:[#allocation7 + $0x568] sm:$0xff] }
 0x10a   : >> { %v357_v16 = vsel %vm309_vm1, %v354_v10, 0.0  ;;  %v372_v35 = vsub.f32 %v352_v17, %v358_v18  ;;  %v550_v10 = vld [vmem:[#allocation7 + $0x558] sm:$0xff]  ;;  %v1438_v17 = vpack.c.bf16 %v552_v7, %v548_v6  ;;  %v941_v6 = vld [vmem:[#allocation9 + $0x108] sm:$0xff] }
 0x10b   : >> { %v371_v19 = vsub.f32 %v351_v15, %v357_v16  ;;  %v547_v15 = vld [vmem:[#allocation7 + $0x540] sm:$0xff]  ;;  %v1534_v18 = vpack.c.bf16 %v554_v12, %v550_v10  ;;  %v927_v12 = vld [vmem:[#allocation9 + $0x98] sm:$0xff] }
 0x10c   : >> { %v551_v16 = vld [vmem:[#allocation7 + $0x560] sm:$0xff]  ;;  %v360_v40 = vpop.permute.xlu1 %359 }
 0x10d   : >> { %656 = vmatprep.mubr.f32.mxu0 %v371_v19  ;;  %810 = vmatprep.mubr.f32.mxu1 %v371_v19  ;;  %v549_v19 = vld [vmem:[#allocation7 + $0x550] sm:$0xff]  ;;  %v1440_v28 = vpack.c.bf16 %v551_v16, %v547_v15  ;;  %v363_v55 = vsel %vm310_vm2, %v360_v40, 0.0 }
 0x10e   : >> { %657 = vmatmul.mubr.f32.vlgmr.msra.gmra.mrb[0].mxu0 %v2179_v8  ;;  %811 = vmatmul.mubr.f32.vlgmr.msra.gmra.mrb[0].mxu1 %v2179_v8  ;;  %v1428_v8 = vpack.c.bf16 %v527_v37, %v523_v36  ;;  %v568_v36 = vld [vmem:[#allocation7 + $0x5e8] sm:$0xff]  ;;  %v566_v37 = vld [vmem:[#allocation7 + $0x5d8] sm:$0xff]  ;;  %v962_v40 = vld [vmem:[#allocation9 + $0x1b0] sm:$0xff] }
 0x10f   : >> { %1421 = vmatpush1.bf16.msra.mxu0 %v1420_v20  ;;  %1517 = vmatpush1.bf16.msra.mxu1 %v1516_v21  ;;  %v553_v20 = vld [vmem:[#allocation7 + $0x570] sm:$0xff]  ;;  %v556_v21 = vld [vmem:[#allocation7 + $0x588] sm:$0xff] }
 0x110   : >> { %1423 = vmatprep.subr.bf16.mxu0 %v1422_v25  ;;  %1519 = vmatprep.subr.bf16.mxu1 %v1518_v27  ;;  %v562_v25 = vld [vmem:[#allocation7 + $0x5b8] sm:$0xff]  ;;  %v366_v27 = vpop.permute.xlu0 %365  ;;  %v1536_v29 = vpack.c.bf16 %v553_v20, %v549_v19  ;;  %v1442_v33 = vpack.c.bf16 %v560_v22, %v556_v21  ;;  %v362_v59 = vpop.permute.xlu1 %361  ;;  %v1550_v20 = vpack.c.bf16 %v927_v12, %v926_v26  ;;  %v942_v22 = vld [vmem:[#allocation9 + $0x110] sm:$0xff] }
 0x111   : >> { %662 = vmatprep.mubr.f32.mxu0 %v372_v35  ;;  %816 = vmatprep.mubr.f32.mxu1 %v372_v35  ;;  %v1538_v34 = vpack.c.bf16 %v562_v25, %v558_v23  ;;  %v557_v35 = vld [vmem:[#allocation7 + $0x590] sm:$0xff]  ;;  %v369_v43 = vsel %vm309_vm1, %v366_v27, 0.0  ;;  %v364_v15 = vsel %vm310_vm2, %v362_v59, 0.0  ;;  %v911_v19 = vld [vmem:[#allocation9 + $0x18] sm:$0xff]  ;;  %v928_v25 = vld [vmem:[#allocation9 + $0xa0] sm:$0xff] }
 0x112   : >> { %663 = vmatmul.mubr.f32.gmra.mrb[2].mxu0 %v2182_v9  ;;  %817 = vmatmul.mubr.f32.gmra.mrb[2].mxu1 %v2182_v9  ;;  %v1432_v9 = vpack.c.bf16 %v535_v48, %v531_v47  ;;  %v565_v47 = vld [vmem:[#allocation7 + $0x5d0] sm:$0xff]  ;;  %v943_v23 = vld [vmem:[#allocation9 + $0x118] sm:$0xff] }
 0x113   : >> { %1425 = vmatpush1.bf16.msra.mxu0 %v1424_v24  ;;  %1521 = vmatpush1.bf16.msra.mxu1 %v1520_v30  ;;  %v561_v24 = vld [vmem:[#allocation7 + $0x5b0] sm:$0xff]  ;;  %v564_v30 = vld [vmem:[#allocation7 + $0x5c8] sm:$0xff]  ;;  %v919_v26 = vld [vmem:[#allocation9 + $0x58] sm:$0xff] }
 0x114   : >> { %1427 = vmatprep.subr.bf16.mxu0 %v1426_v38  ;;  %1523 = vmatprep.subr.bf16.mxu1 %v1522_v39  ;;  %v570_v38 = vld [vmem:[#allocation7 + $0x5f8] sm:$0xff]  ;;  %v373_v39 = vmul.f32 2.0, %v2213_v11  ;;  %v1540_v42 = vpack.c.bf16 %v561_v24, %v557_v35  ;;  %v569_v48 = vld [vmem:[#allocation7 + $0x5f0] sm:$0xff]  ;;  %v956_v11 = vld [vmem:[#allocation9 + $0x180] sm:$0xff] }
 0x115   : >> { %733 = vmatprep.mubr.f32.mxu0 %v1901_v57  ;;  %887 = vmatprep.mubr.f32.mxu1 %v1901_v57  ;;  %v913_v35 = vld [vmem:[#allocation9 + $0x28] sm:$0xff]  ;;  %v934_v59 = vld [vmem:[#allocation9 + $0xd0] sm:$0xff] }
 0x116   : >> { %v375_v53 = vadd.f32 %v373_v39, %v369_v43  ;;  %v931_v39 = vld [vmem:[#allocation9 + $0xb8] sm:$0xff]  ;;  %v914_v43 = vld [vmem:[#allocation9 + $0x30] sm:$0xff] }
 0x117   : >> { %1429 = vmatpush1.bf16.msra.mxu0 %v1428_v8  ;;  %1525 = vmatpush1.bf16.msra.mxu1 %v1524_v46  ;;  %v1446_v8 = vpack.c.bf16 %v568_v36, %v564_v30  ;;  %v1542_v46 = vpack.c.bf16 %v570_v38, %v566_v37  ;;  %v944_v36 = vld [vmem:[#allocation9 + $0x120] sm:$0xff]  ;;  %v945_v37 = vld [vmem:[#allocation9 + $0x128] sm:$0xff]  ;;  %v930_v38 = vld [vmem:[#allocation9 + $0xb0] sm:$0xff] }
 0x118   : >> { %1431 = vmatprep.subr.bf16.mxu0 %v1430_v49  ;;  %1527 = vmatprep.subr.bf16.mxu1 %v1526_v50  ;;  %v368_v49 = vpop.permute.xlu0 %367  ;;  %v924_v50 = vld [vmem:[#allocation9 + $0x80] sm:$0xff]  ;;  %v377_v7 = vadd.f32 %v375_v53, %v363_v55  ;;  %v1558_v45 = vpack.c.bf16 %v931_v39, %v930_v38  ;;  %v950_v12 = vld [vmem:[#allocation9 + $0x150] sm:$0xff]  ;;  %v955_v39 = vld [vmem:[#allocation9 + $0x178] sm:$0xff] }
 0x119   : >> { %v1546_v60 = vpack.c.bf16 %v925_v51, %v924_v50  ;;  %v964_v50 = vld [vmem:[#allocation9 + $0x1c0] sm:$0xff]  ;;  %v965_v51 = vld [vmem:[#allocation9 + $0x1c8] sm:$0xff]  ;;  %v954_v38 = vld [vmem:[#allocation9 + $0x170] sm:$0xff] }
 0x11a   : >> { %v916_v53 = vld [vmem:[#allocation9 + $0x40] sm:$0xff] }
 0x11b   : >> { %1433 = vmatpush1.bf16.msra.mxu0 %v1432_v9  ;;  %1529 = vmatpush1.bf16.msra.mxu1 %v1528_v58  ;;  %v1544_v9 = vpack.c.bf16 %v569_v48, %v565_v47  ;;  %v370_v58 = vsel %vm309_vm1, %v368_v49, 0.0  ;;  %v947_v47 = vld [vmem:[#allocation9 + $0x138] sm:$0xff]  ;;  %v932_v48 = vld [vmem:[#allocation9 + $0xc0] sm:$0xff]  ;;  %v933_v49 = vld [vmem:[#allocation9 + $0xc8] sm:$0xff] }
 0x11c   : >> { %1435 = vmatprep.subr.bf16.mxu0 %v1434_v61  ;;  %1531 = vmatprep.subr.bf16.mxu1 %v1530_v62  ;;  %v1578_v61 = vpack.c.bf16 %v957_v52, %v956_v11  ;;  %v908_v62 = vld [vmem:[#allocation9] sm:$0xff]  ;;  %v376_v10 = vadd.f32 %v374_v54, %v370_v58  ;;  %v1560_v11 = vpack.c.bf16 %v915_v44, %v914_v43  ;;  %v917_v54 = vld [vmem:[#allocation9 + $0x48] sm:$0xff]  ;;  %v586_v43 = vsub.s32 3, %v2145_v1 }
 0x11d   : >> { %v1548_v16 = vpack.c.bf16 %v909_v63, %v908_v62  ;;  %v1562_v55 = vpack.c.bf16 %v933_v49, %v932_v48  ;;  %v949_v58 = vld [vmem:[#allocation9 + $0x148] sm:$0xff]  ;;  %v967_v62 = vld [vmem:[#allocation9 + $0x1d8] sm:$0xff]  ;;  %v1564_v63 = vpack.c.bf16 %v917_v54, %v916_v53 }
 0x11e   : >> { %v378_v27 = vadd.f32 %v376_v10, %v364_v15  ;;  %v937_v15 = vld [vmem:[#allocation9 + $0xe8] sm:$0xff] }
 0x11f   : >> { %1437 = vmatpush1.bf16.msra.mxu0 %v1436_v13  ;;  %1533 = vmatpush1.bf16.msra.mxu1 %v1532_v14  ;;  %v958_v13 = vld [vmem:[#allocation9 + $0x190] sm:$0xff]  ;;  %v959_v14 = vld [vmem:[#allocation9 + $0x198] sm:$0xff] }
 0x120   : >> { %1439 = vmatprep.subr.bf16.mxu0 %v1438_v17  ;;  %1535 = vmatprep.subr.bf16.mxu1 %v1534_v18  ;;  %v1580_v17 = vpack.c.bf16 %v941_v6, %v940_v0  ;;  %v910_v18 = vld [vmem:[#allocation9 + $0x10] sm:$0xff]  ;;  %v1582_v21 = vpack.c.bf16 %v959_v14, %v958_v13  ;;  %v951_v13 = vld [vmem:[#allocation9 + $0x158] sm:$0xff]  ;;  %v936_v14 = vld [vmem:[#allocation9 + $0xe0] sm:$0xff] }
 0x121   : >> { %v1552_v32 = vpack.c.bf16 %v911_v19, %v910_v18  ;;  %v918_v6 = vld [vmem:[#allocation9 + $0x50] sm:$0xff]  ;;  %v1600_v19 = vpack.c.bf16 %v951_v13, %v950_v12 }
 0x122   : >> { %v1568_v18 = vpack.c.bf16 %v919_v26, %v918_v6 }
 0x123   : >> { %1441 = vmatpush1.bf16.msra.mxu0 %v1440_v28  ;;  %1537 = vmatpush1.bf16.msra.mxu1 %v1536_v29  ;;  %v929_v28 = vld [vmem:[#allocation9 + $0xa8] sm:$0xff]  ;;  %v960_v29 = vld [vmem:[#allocation9 + $0x1a0] sm:$0xff] }
 0x124   : >> { %1443 = vmatprep.subr.bf16.mxu0 %v1442_v33  ;;  %1539 = vmatprep.subr.bf16.mxu1 %v1538_v34  ;;  %v1584_v33 = vpack.c.bf16 %v943_v23, %v942_v22  ;;  %v912_v34 = vld [vmem:[#allocation9 + $0x20] sm:$0xff]  ;;  %v1554_v24 = vpack.c.bf16 %v929_v28, %v928_v25  ;;  %v1586_v30 = vpack.c.bf16 %v961_v31, %v960_v29  ;;  %v921_v23 = vld [vmem:[#allocation9 + $0x68] sm:$0xff]  ;;  %v938_v31 = vld [vmem:[#allocation9 + $0xf0] sm:$0xff] }
 0x125   : >> { %v920_v22 = vld [vmem:[#allocation9 + $0x60] sm:$0xff]  ;;  %v953_v28 = vld [vmem:[#allocation9 + $0x168] sm:$0xff] }
 0x126   : >> { %v952_v25 = vld [vmem:[#allocation9 + $0x160] sm:$0xff] }
 0x127   : >> { %1445 = vmatpush1.bf16.msra.mxu0 %v1444_v41  ;;  %1541 = vmatpush1.bf16.msra.mxu1 %v1540_v42  ;;  %v963_v41 = vld [vmem:[#allocation9 + $0x1b8] sm:$0xff]  ;;  %v1588_v42 = vpack.c.bf16 %v945_v37, %v944_v36  ;;  %v1604_v29 = vpack.c.bf16 %v953_v28, %v952_v25 }
 0x128   : >> { %1447 = vmatprep.subr.bf16.mxu0 %v1446_v8  ;;  %1543 = vmatprep.subr.bf16.mxu1 %v1542_v46  ;;  %v1590_v8 = vpack.c.bf16 %v963_v41, %v962_v40  ;;  %v946_v46 = vld [vmem:[#allocation9 + $0x130] sm:$0xff]  ;;  %v1608_v40 = vpack.c.bf16 %v955_v39, %v954_v38  ;;  %v574_v41 = vsub.s32 0, %v2145_v1 }
 0x129   : >> { %v1592_v52 = vpack.c.bf16 %v947_v47, %v946_v46  ;;  %v587_v46 = vrot.slane %v2159_v4, %v586_v43 }
 0x12a   : >> { %v575_v44 = vrot.slane %v2159_v4, %v574_v41 }
 0x12b   : >> { %1449 = vmatpush1.bf16.msra.mxu0 %v1448_v56  ;;  %1545 = vmatpush1.bf16.msra.mxu1 %v1544_v9  ;;  %v1594_v56 = vpack.c.bf16 %v965_v51, %v964_v50  ;;  %v948_v9 = vld [vmem:[#allocation9 + $0x140] sm:$0xff] }
 0x12c   : >> { %1547 = vmatprep.subr.bf16.mxu0 %v1546_v60  ;;  %1579 = vmatprep.subr.bf16.mxu1 %v1578_v61  ;;  %v935_v60 = vld [vmem:[#allocation9 + $0xd8] sm:$0xff]  ;;  %v966_v61 = vld [vmem:[#allocation9 + $0x1d0] sm:$0xff]  ;;  %v1596_v0 = vpack.c.bf16 %v949_v58, %v948_v9 }
 0x12d   : >> { %v1598_v10 = vpack.c.bf16 %v967_v62, %v966_v61 }
 0x12e   : >> { %734 = vmatmul.mubr.f32.vlgmr.msra.gmra.mrb[0].mxu0 %v377_v7  ;;  %888 = vmatmul.mubr.f32.vlgmr.msra.gmra.mrb[0].mxu1 %v377_v7  ;;  %v1566_v7 = vpack.c.bf16 %v935_v60, %v934_v59 }
 0x12f   : >> { %739 = vmatprep.mubr.f32.mxu0 %v1901_v57  ;;  %893 = vmatprep.mubr.f32.mxu1 %v1901_v57  ;;  %v1556_v57 = vpack.c.bf16 %v913_v35, %v912_v34  ;;  %v971_v35 = vld [vmem:[#allocation9 + $0x1f8] sm:$0xff] }
 0x130   : >> { %1549 = vmatpush3.bf16.msra.mxu0 %v1548_v16  ;;  %1581 = vmatpush3.bf16.msra.mxu1 %v1580_v17  ;;  %v968_v16 = vld [vmem:[#allocation9 + $0x1e0] sm:$0xff]  ;;  %v969_v17 = vld [vmem:[#allocation9 + $0x1e8] sm:$0xff] }
 0x131   : >> { %1551 = vmatprep.subr.bf16.mxu0 %v1550_v20  ;;  %1583 = vmatprep.subr.bf16.mxu1 %v1582_v21  ;;  %v1570_v20 = vpack.c.bf16 %v937_v15, %v936_v14  ;;  %v1602_v21 = vpack.c.bf16 %v969_v17, %v968_v16 }
 0x132   : >> { %740 = vmatmul.mubr.f32.gmra.mrb[2].mxu0 %v378_v27  ;;  %894 = vmatmul.mubr.f32.gmra.mrb[2].mxu1 %v378_v27  ;;  %v1572_v27 = vpack.c.bf16 %v921_v23, %v920_v22 }
 0x134   : >> { %1553 = vmatpush3.bf16.msra.mxu0 %v1552_v32  ;;  %1585 = vmatpush3.bf16.msra.mxu1 %v1584_v33  ;;  %v939_v32 = vld [vmem:[#allocation9 + $0xf8] sm:$0xff]  ;;  %v970_v33 = vld [vmem:[#allocation9 + $0x1f0] sm:$0xff] }
 0x135   : >> { %1555 = vmatprep.subr.bf16.mxu0 %v1554_v24  ;;  %1587 = vmatprep.subr.bf16.mxu1 %v1586_v30  ;;  %v1574_v34 = vpack.c.bf16 %v939_v32, %v938_v31  ;;  %v922_v24 = vld [vmem:[#allocation9 + $0x70] sm:$0xff]  ;;  %v923_v30 = vld [vmem:[#allocation9 + $0x78] sm:$0xff]  ;;  %v1606_v36 = vpack.c.bf16 %v971_v35, %v970_v33 }
 0x136   : >> { %v1576_v37 = vpack.c.bf16 %v923_v30, %v922_v24 }
 0x138   : >> { %1557 = vmatpush3.bf16.msra.mxu0 %v1556_v57  ;;  %1589 = vmatpush3.bf16.msra.mxu1 %v1588_v42  ;;  %v582_v57 = vsub.s32 2, %v2145_v1  ;;  %v578_v42 = vsub.s32 1, %v2145_v1 }
 0x139   : >> { %1559 = vmatprep.subr.bf16.mxu0 %v1558_v45  ;;  %1591 = vmatprep.subr.bf16.mxu1 %v1590_v8 }
 0x13a   : >> { %v583_v45 = vrot.slane %v2159_v4, %v582_v57  ;;  %v579_v8 = vrot.slane %v2159_v4, %v578_v42 }
 0x13c   : >> { %1561 = vmatpush3.bf16.msra.mxu0 %v1560_v11  ;;  %1593 = vmatpush3.bf16.msra.mxu1 %v1592_v52 }
 0x13d   : >> { %1563 = vmatprep.subr.bf16.mxu0 %v1562_v55  ;;  %1595 = vmatprep.subr.bf16.mxu1 %v1594_v56 }
 0x140   : >> { %1565 = vmatpush3.bf16.msra.mxu0 %v1564_v63  ;;  %1597 = vmatpush3.bf16.msra.mxu1 %v1596_v0 }
 0x141   : >> { %1567 = vmatprep.subr.bf16.mxu0 %v1566_v7  ;;  %1599 = vmatprep.subr.bf16.mxu1 %v1598_v10 }
 0x144   : >> { %1569 = vmatpush3.bf16.msra.mxu0 %v1568_v18  ;;  %1601 = vmatpush3.bf16.msra.mxu1 %v1600_v19 }
 0x145   : >> { %1571 = vmatprep.subr.bf16.mxu0 %v1570_v20  ;;  %1603 = vmatprep.subr.bf16.mxu1 %v1602_v21 }
 0x148   : >> { %1573 = vmatpush3.bf16.msra.mxu0 %v1572_v27  ;;  %1605 = vmatpush3.bf16.msra.mxu1 %v1604_v29  ;;  %v1711_v29 = vld [vmem:[%s2166_s24] sm:$0xff] }
 0x149   : >> { %1575 = vmatprep.subr.bf16.mxu0 %v1574_v34  ;;  %1607 = vmatprep.subr.bf16.mxu1 %v1606_v36  ;;  %v1712_v34 = vld [vmem:[%s2166_s24 + $0x8] sm:$0xff] }
 0x14c   : >> { %1577 = vmatpush3.bf16.msra.mxu0 %v1576_v37  ;;  %1609 = vmatpush3.bf16.msra.mxu1 %v1608_v40 }
 0x201   : >> { %v735_v47 = vpop.f32.mrb[0].mxu0  ;;  %v889_v48 = vpop.f32.mrb[0].mxu1 }
 0x202   : >> { %v1610_v49 = vadd.f32 %v735_v47, %v575_v44  ;;  %v1614_v50 = vadd.f32 %v889_v48, %v583_v45  ;;  %v737_v51 = vpop.f32.mrb[1].mxu0  ;;  %v891_v11 = vpop.f32.mrb[1].mxu1 }
 0x203   : >> { %v1611_v52 = vadd.f32 %v737_v51, %v579_v8  ;;  %v1615_v53 = vadd.f32 %v891_v11, %v587_v46 }
 0x204   : >> { %v900_v58 = vmax.f32 %v1610_v49, 0.0  ;;  %v902_v59 = vmax.f32 %v1614_v50, 0.0 }
 0x205   : >> { %v901_v54 = vmax.f32 %v1611_v52, 0.0  ;;  %v903_v55 = vmax.f32 %v1615_v53, 0.0  ;;  %v741_v56 = vpop.f32.mrb[2].mxu0  ;;  %v895_v9 = vpop.f32.mrb[2].mxu1 }
 0x206   : >> { %v1612_v60 = vadd.f32 %v741_v56, %v575_v44  ;;  %v1616_v61 = vadd.f32 %v895_v9, %v583_v45  ;;  %v743_v62 = vpop.f32.mrb[3].mxu0  ;;  %v897_v63 = vpop.f32.mrb[3].mxu1 }
 0x207   : >> { %v1613_v0 = vadd.f32 %v743_v62, %v579_v8  ;;  %v1617_v6 = vadd.f32 %v897_v63, %v587_v46  ;;  %1042 = vmatprep.mubr.f32.mxu0 %v901_v54  ;;  %1117 = vmatprep.mubr.f32.mxu1 %v903_v55 }
 0x208   : >> { %1043 = vmatmul.mubr.f32.vlgmr.msra.gmra.mrb[4].mxu0 %v900_v58  ;;  %1118 = vmatmul.mubr.f32.vlgmr.msra.gmra.mrb[4].mxu1 %v902_v59  ;;  %v904_v10 = vmax.f32 %v1612_v60, 0.0  ;;  %v906_v12 = vmax.f32 %v1616_v61, 0.0 }
 0x209   : >> { %v905_v26 = vmax.f32 %v1613_v0, 0.0  ;;  %v907_v7 = vmax.f32 %v1617_v6, 0.0 }
 0x20b   : >> { %1047 = vmatprep.mubr.f32.mxu0 %v905_v26  ;;  %1122 = vmatprep.mubr.f32.mxu1 %v907_v7 }
 0x20c   : >> { %1048 = vmatmul.mubr.f32.gmra.mrb[6].mxu0 %v904_v10  ;;  %1123 = vmatmul.mubr.f32.gmra.mrb[6].mxu1 %v906_v12 }
 0x2db   : >> { %v1310_v13 = vpop.f32.mrb[4].mxu0  ;;  %v1348_v14 = vpop.f32.mrb[4].mxu1 }
 0x2dc   : >> { %v1311_v15 = vpop.f32.mrb[5].mxu0  ;;  %v1349_v16 = vpop.f32.mrb[5].mxu1 }
 0x2dd   : >> { %v1312_v17 = vadd.f32 %v1311_v15, %v1310_v13  ;;  %v1350_v18 = vadd.f32 %v1349_v16, %v1348_v14 }
 0x2df   : >> { %v1045_v19 = vadd.f32 %v1312_v17, %v2164_v5  ;;  %v1313_v20 = vpop.f32.mrb[6].mxu0  ;;  %v1351_v21 = vpop.f32.mrb[6].mxu1 }
 0x2e0   : >> { %v1314_v22 = vpop.f32.mrb[7].mxu0  ;;  %v1352_v23 = vpop.f32.mrb[7].mxu1 }
 0x2e1   : >> { %v1120_v25 = vadd.f32 %v1350_v18, %v1045_v19  ;;  %v1315_v27 = vadd.f32 %v1314_v22, %v1313_v20  ;;  %v1353_v28 = vadd.f32 %v1352_v23, %v1351_v21 }
 0x2e3   : >> { %v1128_v31 = vadd.f32 %v1711_v29, %v1120_v25  ;;  %v1050_v32 = vadd.f32 %v1315_v27, %v2164_v5  ;;  %322 = sbr.rel (!%p319_p8) target bundleno = 138 (0x8a), region = 103 }
 0x2e5   : >> { %1130 = vst [vmem:[%s2166_s24] sm:$0xff] %v1128_v31  ;;  %v1125_v33 = vadd.f32 %v1353_v28, %v1050_v32 }
 0x2e7   : >> { %v1129_v35 = vadd.f32 %v1712_v34, %v1125_v33 }
 0x2e9   : >> { %1131 = vst [vmem:[%s2166_s24 + $0x8] sm:$0xff] %v1129_v35 }
 0x2ea PF: > { %s1277_s21 = sshll.u32 %s1973_s0, 8  ;;  %s1146_s26 = sshll.u32 %s2166_s24, 4  ;;  %s2279_s26 = int_to_ptr.vmem [resolvable:$true] %s1146_s26 }
 0x2eb   : > { %s2276_s25 = scalar_lea.hbm %s2329_s6, %s1277_s21  ;;  %s1133_s12 = scalar_lea.sflag [#allocation6], %s2130_s30 }
 0x2ec   : > { %s1809_s23 = scalar_lea.vmem %s2279_s26, 256  ;;  %p2343_p1 = scmp.ne.s32.totalorder %s2338_s17, 0 }
 0x2ed   : > { %p1810_p12 = scmp.ne.s32.totalorder %s2279_s26, %s1809_s23  ;;  %s1902_s16 = smov [#allocation10]  }
 0x2ee   : > { %s1813_s27 = sshll.u32 %s1902_s16, 4  ;;  %s1814_s27 = int_to_ptr.vmem [resolvable:$false] %s1813_s27 }
 0x2ef   : > { %p1811_p5 = pnand %p1810_p12, %p2343_p1  ;;  %s1815_s0 = scalar_lea.vmem %s1814_s27, 512 }
 0x2f0   : > { %p1816_p9 = scmp.lt.s32.totalorder %s2279_s26, %s1814_s27  ;;  %p1817_p13 = scmp.lt.s32.totalorder %s1815_s0, %s1809_s23 }
 0x2f1   : > { %p1812_p2 = pneg %p1811_p5 }
 0x2f2   : > { %p1818_p7 = por %p1817_p13, %p1816_p9 }
 0x2f4   : > { %p1819_p10 = pnand %p1818_p7, %p1812_p2 }
 0x2f6   : > { %1822 = shalt.err (!%p1819_p10)
}
 0x2f7   : > { %s1823_s28 = scalar_lea.hbm %s2276_s25, 256  ;;  %s1827_s11 = scalar_lea.hbm %s2329_s6, 512 }
 0x2f8   : > { %p1824_p0 = scmp.ne.s32.totalorder %s2276_s25, %s1823_s28  ;;  %p1828_p4 = scmp.lt.u32.totalorder %s2276_s25, %s2329_s6 }
 0x2f9   : > { %p1829_p6 = scmp.lt.u32.totalorder %s1827_s11, %s1823_s28  ;;  %p1831_p12 = scmp.lt.u32.totalorder %s1823_s28, %s2276_s25 }
 0x2fa   : > { %p1825_p11 = pnand %p1824_p0, %p2343_p1 }
 0x2fb   : > { %p1830_p8 = por %p1829_p6, %p1828_p4 }
 0x2fc   : > { %p1826_p3 = pneg %p1825_p11 }
 0x2fd   : > { %p1832_p5 = por %p1831_p12, %p1830_p8 }
 0x2ff   : > { %p1833_p2 = pnand %p1832_p5, %p1826_p3 }
 0x301   : > { %1836 = shalt.err (!%p1833_p2)
}
 0x302   : > { %s1903_s21 = smov 128   ;;  %s1904_s22 = smov 8  }
 0x303   : > { %1636 = dma.vmem_to_hbm [thread:$0]  (%p2343_p1), %s2279_s26, 256, %s2276_s25, %s1133_s12, %s1903_s21, %s1903_s21, %s1904_s22  }
 0x304 PF: > { %s1161_s14 = sand.u32 1, %s1873_s7   ;;  %p2344_p9 = scmp.ne.s32.totalorder %s2334_s13, 0 }
 0x305   : > { %p2345_p13 = scmp.ge.s32.totalorder %s1885_s10, 2  ;;  %s1162_s23 = scalar_lea.sflag [#allocation6], %s1161_s14 }
 0x307   : > { %p1650_p7 = pnand %p2345_p13, %p2344_p9 }
 0x309   : > { %1868 = dma.done.wait (!%p1650_p7), %s1162_s23, 256  }
 0x30a   : > { %1870 = vsyncadd (!%p1650_p7), %s1162_s23, 4294967040  ;;  %p24_p10 = scmp.ge.s32.totalorder %s2065_s29, 4   ;;  %s2346_s7 = smov %s1877_s8 }
 0x30b   : > { %s2347_s8 = smov %s1881_s9  ;;  %s2348_s9 = smov %s2074_s15 }
 0x30c   : > { %s2349_s10 = smov %s2065_s29  ;;  %26 = sbr.rel (!%p24_p10) target bundleno = 18 (0x12), region = 114 }
 0x313   :  { %1167 = vsyncpa [#allocation5], 1 }
 0x314   :  { %1169 = vsyncpa [#allocation5 + $0x1], 1 }
 0x315   :  { %1170 = vsyncpa [#allocation8], 1 }
 0x316   :  { %1171 = vsyncpa [#allocation6], 1 }
 0x317   :  { %1173 = vsyncpa [#allocation6 + $0x1], 1 }

</bundles_post_ra>
